<compile_context>
chip_gen: v7x
topology: tpu7x:2x2x1
jax: 0.10.0
libtpu: 0.0.40
codegen_flags: <defaults>
</compile_context>

<pallas_src>
import functools

import jax
import jax.numpy as jnp
import numpy as np
from jax.experimental import pallas as pl
from jax.experimental.pallas import tpu as pltpu

EPS = 1e-5

# ----------------------------- Pallas kernel -------------------------------


def gin_block_kernel(h0_ref, a_ref, medeg_ref, nw2_ref, nb2_ref, webe_ref,
                     w1_ref, b1_ref, w2s_ref, sh_ref, pool_ref, out_ref,
                     *, num_layers, emb_dim):
    f32, bf16 = jnp.float32, jnp.bfloat16
    D = emb_dim

    # Node-embedding MLP tail (the one-hot Linear + BN were pre-folded into
    # h0 by a gather outside): ReLU on the VPU in f32, Linear on the MXU bf16.
    h = jnp.maximum(h0_ref[...], 0.0)
    h = jnp.dot(h.astype(bf16), nw2_ref[...],
                preferred_element_type=f32) + nb2_ref[...]

    # All L layers' edge constants in a SINGLE K=(Fe+1) matmul:
    #   [me | deg] @ [[We_l],[be_l]]_l  ->  [GB*N, L*D]
    edge_c_all = jnp.dot(medeg_ref[...], webe_ref[...],
                         preferred_element_type=f32)

    adj = a_ref[...]                        # bf16 block-diagonal adjacency

    for layer in range(num_layers):         # statically unrolled (L small)
        edge_c = edge_c_all[:, layer * D:(layer + 1) * D]   # lane-aligned slice
        agg = jnp.dot(adj, h.astype(bf16),
                      preferred_element_type=f32) + edge_c
        # GINConv MLP: Linear(D,2D) -> ReLU -> Linear(2D,D); BN folded into
        # w2s / sh on the host; trailing ReLU on all but the last layer.
        z = jnp.maximum(
            jnp.dot(agg.astype(bf16), w1_ref[layer],
                    preferred_element_type=f32) + b1_ref[layer], 0.0)
        z = jnp.dot(z.astype(bf16), w2s_ref[layer],
                    preferred_element_type=f32) + sh_ref[layer]
        if layer != num_layers - 1:
            z = jnp.maximum(z, 0.0)
        h = z
        # dropout: identity in eval mode

    # JK='last' + AvgPooling readout per graph: tiny [GB, GB*N] @ [GB*N, D].
    out_ref[...] = jnp.dot(pool_ref[...], h, preferred_element_type=f32)


# --------------------------- one-time param folding -------------------------


def fold_params(params):
    """Fold BatchNorm running stats into the adjacent Linears (in f32), stack
    per-layer params, and cast the large matmul operands to bf16.
    Call ONCE at parameter-load time and cache the result."""
    bf16 = jnp.bfloat16
    p = params["node_emb"]
    s1 = p["g"] * jax.lax.rsqrt(p["rv"] + EPS)               # [1, D]
    nw1 = p["W1"] * s1                                       # BN scale into W1
    nsh1 = (p["b1"] - p["rm"]) * s1 + p["bt"]                # BN shift (+ bias)

    layers = params["layers"]
    # Per-layer edge Linear fused into ONE operand:  [me|deg] @ [[We],[be]]
    webe = jnp.concatenate(
        [jnp.concatenate([l["We"], l["be"]], axis=0) for l in layers], axis=1)
    w1 = jnp.stack([l["W1"] for l in layers])                # [L, D, 2D]
    b1 = jnp.stack([l["b1"] for l in layers])                # [L, 1, 2D]
    scale = jnp.stack([l["g"] * jax.lax.rsqrt(l["rv"] + EPS) for l in layers])
    w2s = jnp.stack([l["W2"] for l in layers]) * scale       # [L, 2D, D]
    sh = (jnp.stack([l["b2"] - l["rm"] for l in layers]) * scale
          + jnp.stack([l["bt"] for l in layers]))            # [L, 1, D]
    return dict(
        nw1=nw1, nsh1=nsh1,                                  # f32 (gather path)
        nw2=p["W2"].astype(bf16), nb2=p["b2"],
        webe=webe.astype(bf16),                              # [Fe+1, L*D] bf16
        w1=w1.astype(bf16), b1=b1,
        w2s=w2s.astype(bf16), sh=sh)


# ------------------------------ jitted forward ------------------------------


@functools.partial(jax.jit, static_argnames=("graphs_per_block",))
def gin_forward(folded, node_types, edge_types, src, dst, *, graphs_per_block):
    f32, bf16 = jnp.float32, jnp.bfloat16
    G, N = node_types.shape
    GB = graphs_per_block
    B = G // GB
    L, D, H = folded["w1"].shape
    Fe = folded["webe"].shape[0] - 1

    # --- graph preprocessing (fused into this jit, not in the kernel) -------
    # node embedding first Linear + BN on one-hot features == row gather
    h0 = folded["nw1"][node_types] + folded["nsh1"]          # [G, N, D] f32
    h0 = h0.reshape(B, GB * N, D)

    gi = jnp.arange(G)[:, None]                              # [G, 1]
    e_onehot = jax.nn.one_hot(edge_types, Fe, dtype=f32)     # [G, E, Fe]
    me = jnp.zeros((G, N, Fe), f32).at[gi, dst].add(e_onehot)   # M @ x_edge
    deg = jnp.sum(me, axis=-1, keepdims=True)                   # in-degree
    medeg = jnp.concatenate([me, deg], axis=-1)
    medeg = medeg.reshape(B, GB * N, Fe + 1).astype(bf16)

    A = jnp.zeros((G, N, N), f32).at[gi, dst, src].add(1.0)  # A[v,u]=#edges u->v
    Ab = A.reshape(B, GB, N, N)
    eye = jnp.eye(GB, dtype=f32)
    a_bd = Ab[:, :, None, :, :] * eye[None, :, :, None, None]
    a_bd = a_bd.transpose(0, 1, 3, 2, 4).reshape(B, GB * N, GB * N).astype(bf16)

    pool = jnp.repeat(jnp.eye(GB, dtype=f32), N, axis=1) / N   # [GB, GB*N]

    args = (h0, a_bd, medeg, folded["nw2"], folded["nb2"], folded["webe"],
            folded["w1"], folded["b1"], folded["w2s"], folded["sh"], pool)

    in_specs = [
        pl.BlockSpec((pl.Squeezed(), GB * N, D), lambda b: (b, 0, 0)),       # h0
        pl.BlockSpec((pl.Squeezed(), GB * N, GB * N), lambda b: (b, 0, 0)),  # A
        pl.BlockSpec((pl.Squeezed(), GB * N, Fe + 1), lambda b: (b, 0, 0)),  # medeg
        pl.BlockSpec((D, D), lambda b: (0, 0)),                              # nw2
        pl.BlockSpec((1, D), lambda b: (0, 0)),                              # nb2
        pl.BlockSpec((Fe + 1, L * D), lambda b: (0, 0)),                     # webe
        pl.BlockSpec((L, D, H), lambda b: (0, 0, 0)),                        # w1
        pl.BlockSpec((L, 1, H), lambda b: (0, 0, 0)),                        # b1
        pl.BlockSpec((L, H, D), lambda b: (0, 0, 0)),                        # w2s
        pl.BlockSpec((L, 1, D), lambda b: (0, 0, 0)),                        # sh
        pl.BlockSpec((GB, GB * N), lambda b: (0, 0)),                        # pool
    ]
    out_spec = pl.BlockSpec((pl.Squeezed(), GB, D), lambda b: (b, 0, 0))

    out = pl.pallas_call(
        functools.partial(gin_block_kernel, num_layers=L, emb_dim=D),
        out_shape=jax.ShapeDtypeStruct((B, GB, D), f32),
        grid=(B,),
        in_specs=in_specs,
        out_specs=out_spec,
        compiler_params=pltpu.CompilerParams(
            dimension_semantics=("parallel",)),
    )(*args)
    return out.reshape(G, D)


# ------------------------------- reference ----------------------------------


def _bn(x, gamma, beta, mean, var):
    return (x - mean) * jax.lax.rsqrt(var + EPS) * gamma + beta


def gin_reference(params, node_types, edge_types, src, dst,
                  f_node, f_edge, num_layers):
    """Pure-jnp f32 reference with the original (unfolded) math, per graph."""
    G, N = node_types.shape
    E = edge_types.shape[1]
    p = params["node_emb"]
    outs = []
    for g in range(G):
        x_node = jax.nn.one_hot(node_types[g], f_node, dtype=jnp.float32)
        x_edge = jax.nn.one_hot(edge_types[g], f_edge, dtype=jnp.float32)
        A = jnp.zeros((N, N), jnp.float32).at[dst[g], src[g]].add(1.0)
        M = jnp.zeros((N, E), jnp.float32).at[dst[g], jnp.arange(E)].set(1.0)

        h = x_node @ p["W1"] + p["b1"]
        h = _bn(h, p["g"], p["bt"], p["rm"], p["rv"])
        h = jnp.maximum(h, 0.0)
        h = h @ p["W2"] + p["b2"]
        for layer in range(num_layers):
            lp = params["layers"][layer]
            e = x_edge @ lp["We"] + lp["be"]
            agg = A @ h + M @ e
            z = jnp.maximum(agg @ lp["W1"] + lp["b1"], 0.0)
            z = z @ lp["W2"] + lp["b2"]
            z = _bn(z, lp["g"], lp["bt"], lp["rm"], lp["rv"])
            if layer != num_layers - 1:
                z = jnp.maximum(z, 0.0)
            h = z
        outs.append(jnp.mean(h, axis=0, keepdims=True))
    return jnp.concatenate(outs, axis=0)


# --------------------------- deterministic init -----------------------------


def linear_params(key, fan_in, fan_out):
    kw, kb = jax.random.split(key)
    bound = 1.0 / np.sqrt(fan_in)
    W = jax.random.uniform(kw, (fan_in, fan_out), jnp.float32, -bound, bound)
    b = jax.random.uniform(kb, (1, fan_out), jnp.float32, -bound, bound)
    return W, b


def bn_params(key, dim):
    k1, k2, k3, k4 = jax.random.split(key, 4)
    g = 1.0 + 0.1 * jax.random.normal(k1, (1, dim), jnp.float32)
    bt = 0.1 * jax.random.normal(k2, (1, dim), jnp.float32)
    rm = 0.1 * jax.random.normal(k3, (1, dim), jnp.float32)
    rv = 1.0 + 0.1 * jax.random.uniform(k4, (1, dim), jnp.float32)
    return g, bt, rm, rv


def make_params(key, f_node, f_edge, emb_dim, num_layers):
    keys = jax.random.split(key, 2 + num_layers)
    k0, k1 = jax.random.split(keys[0])
    W1, b1 = linear_params(k0, f_node, emb_dim)
    W2, b2 = linear_params(k1, emb_dim, emb_dim)
    g, bt, rm, rv = bn_params(keys[1], emb_dim)
    node_emb = dict(W1=W1, b1=b1, W2=W2, b2=b2, g=g, bt=bt, rm=rm, rv=rv)

    layers = []
    for i in range(num_layers):
        ka, kb, kc, kd = jax.random.split(keys[2 + i], 4)
        We, be = linear_params(ka, f_edge, emb_dim)            # edge emb Linear
        Wm1, bm1 = linear_params(kb, emb_dim, 2 * emb_dim)     # GIN MLP layer 1
        Wm2, bm2 = linear_params(kc, 2 * emb_dim, emb_dim)     # GIN MLP layer 2
        g, bt, rm, rv = bn_params(kd, emb_dim)
        layers.append(dict(We=We, be=be, W1=Wm1, b1=bm1, W2=Wm2, b2=bm2,
                           g=g, bt=bt, rm=rm, rv=rv))
    return dict(node_emb=node_emb, layers=layers)


# ---------------------------------- main ------------------------------------

if __name__ == "__main__":
    G, N, E = 8, 16, 32            # graphs, nodes/graph, edges/graph
    F_NODE, F_EDGE = 8, 4          # categorical vocab sizes (one-hot inputs)
    EMB_DIM, NUM_LAYERS = 128, 5   # lane-dense emb_dim (multiple of 128)
    GB = 4                         # graphs per grid block (64 MXU rows/step)

    key = jax.random.PRNGKey(0)
    k_nt, k_et, k_src, k_dst, k_params = jax.random.split(key, 5)
    node_types = jax.random.randint(k_nt, (G, N), 0, F_NODE)
    edge_types = jax.random.randint(k_et, (G, E), 0, F_EDGE)
    src = jax.random.randint(k_src, (G, E), 0, N)
    dst = jax.random.randint(k_dst, (G, E), 0, N)

    params = make_params(k_params, F_NODE, F_EDGE, EMB_DIM, NUM_LAYERS)
    folded = fold_params(params)   # one-time, cached pytree (off the hot path)

    out = gin_forward(folded, node_types, edge_types, src, dst,
                      graphs_per_block=GB)
    out = jax.block_until_ready(out)

    ref = gin_reference(params, node_types, edge_types, src, dst,
                        F_NODE, F_EDGE, NUM_LAYERS)
    # Tolerance covers the bf16 weight/activation casts on the MXU path.
    np.testing.assert_allclose(np.asarray(out), np.asarray(ref),
                               rtol=5e-2, atol=5e-2)
    assert out.shape == (G, EMB_DIM)
    print("KERNEL_OK")
</pallas_src>

<mosaic_0001>
module attributes {stable_mosaic.version = 11 : i64} {
  func.func private @main(%arg0: i32) attributes {dimension_semantics = [#tpu.dimension_semantics<core_parallel>], iteration_bounds = array<i64: 2>, tpu.core_type = #tpu.core_type<sc_scalar_subcore>, window_params = []} {
    return
  }
}

module attributes {stable_mosaic.version = 11 : i64} {
  func.func private @main(%arg0: i32) attributes {dimension_semantics = [#tpu.dimension_semantics<core_parallel>], iteration_bounds = array<i64: 2>, tpu.core_type = #tpu.core_type<sc_scalar_subcore>, window_params = []} {
    return
  }
}

module attributes {stable_mosaic.version = 11 : i64} {
  func.func @gin_block_kernel(%arg0: i32, %arg1: memref<1x64x128xf32, #tpu.memory_space<vmem>>, %arg2: memref<1x64x64xbf16, #tpu.memory_space<vmem>>, %arg3: memref<1x64x5xbf16, #tpu.memory_space<vmem>>, %arg4: memref<128x128xbf16, #tpu.memory_space<vmem>>, %arg5: memref<1x128xf32, #tpu.memory_space<vmem>>, %arg6: memref<5x640xbf16, #tpu.memory_space<vmem>>, %arg7: memref<5x128x256xbf16, #tpu.memory_space<vmem>>, %arg8: memref<5x1x256xf32, #tpu.memory_space<vmem>>, %arg9: memref<5x256x128xbf16, #tpu.memory_space<vmem>>, %arg10: memref<5x1x128xf32, #tpu.memory_space<vmem>>, %arg11: memref<4x64xf32, #tpu.memory_space<vmem>>, %arg12: memref<1x4x128xf32, #tpu.memory_space<vmem>>) attributes {dimension_semantics = [#tpu.dimension_semantics<parallel>], iteration_bounds = array<i64: 2>, scalar_prefetch = 0 : i64, scratch_operands = 0 : i64, tpu.core_type = #tpu.core_type<tc>, window_params = [{transform_indices = @transform_0, window_bounds = array<i64: 1, 64, 128>}, {transform_indices = @transform_1, window_bounds = array<i64: 1, 64, 64>}, {transform_indices = @transform_2, window_bounds = array<i64: 1, 64, 5>}, {pipeline_mode = #tpu.pipeline_mode<synchronous>, transform_indices = @transform_3, window_bounds = array<i64: 128, 128>}, {pipeline_mode = #tpu.pipeline_mode<synchronous>, transform_indices = @transform_4, window_bounds = array<i64: 1, 128>}, {pipeline_mode = #tpu.pipeline_mode<synchronous>, transform_indices = @transform_5, window_bounds = array<i64: 5, 640>}, {pipeline_mode = #tpu.pipeline_mode<synchronous>, transform_indices = @transform_6, window_bounds = array<i64: 5, 128, 256>}, {pipeline_mode = #tpu.pipeline_mode<synchronous>, transform_indices = @transform_7, window_bounds = array<i64: 5, 1, 256>}, {pipeline_mode = #tpu.pipeline_mode<synchronous>, transform_indices = @transform_8, window_bounds = array<i64: 5, 256, 128>}, {pipeline_mode = #tpu.pipeline_mode<synchronous>, transform_indices = @transform_9, window_bounds = array<i64: 5, 1, 128>}, {pipeline_mode = #tpu.pipeline_mode<synchronous>, transform_indices = @transform_10, window_bounds = array<i64: 4, 64>}, {transform_indices = @transform_11, window_bounds = array<i64: 1, 4, 128>}]} {
    %c0 = arith.constant 0 : index
    %c0_0 = arith.constant 0 : index
    %c0_1 = arith.constant 0 : index
    %0 = vector.load %arg1[%c0, %c0_0, %c0_1] : memref<1x64x128xf32, #tpu.memory_space<vmem>>, vector<1x64x128xf32>
    %1 = vector.shape_cast %0 : vector<1x64x128xf32> to vector<64x128xf32>
    %cst = arith.constant 0.000000e+00 : f32
    %2 = vector.broadcast %cst : f32 to vector<64x128xf32>
    %3 = arith.maximumf %1, %2 : vector<64x128xf32>
    %4 = arith.truncf %3 : vector<64x128xf32> to vector<64x128xbf16>
    %c0_2 = arith.constant 0 : index
    %c0_3 = arith.constant 0 : index
    %5 = vector.load %arg4[%c0_2, %c0_3] : memref<128x128xbf16, #tpu.memory_space<vmem>>, vector<128x128xbf16>
    %cst_4 = arith.constant dense<0.000000e+00> : vector<64x128xf32>
    %6 = tpu.matmul %4, %5, %cst_4 {dimension_numbers = #tpu.dot_dimension_numbers<[1], [0], [0], [1], [0, 0, 1, 1], [], []>} : vector<64x128xbf16>, vector<128x128xbf16>, vector<64x128xf32> -> vector<64x128xf32>
    %c0_5 = arith.constant 0 : index
    %c0_6 = arith.constant 0 : index
    %7 = vector.load %arg5[%c0_5, %c0_6] : memref<1x128xf32, #tpu.memory_space<vmem>>, vector<1x128xf32>
    %8 = vector.broadcast %7 : vector<1x128xf32> to vector<64x128xf32>
    %9 = arith.addf %6, %8 : vector<64x128xf32>
    %c0_7 = arith.constant 0 : index
    %c0_8 = arith.constant 0 : index
    %c0_9 = arith.constant 0 : index
    %10 = vector.load %arg3[%c0_7, %c0_8, %c0_9] : memref<1x64x5xbf16, #tpu.memory_space<vmem>>, vector<1x64x5xbf16>
    %11 = vector.shape_cast %10 : vector<1x64x5xbf16> to vector<64x5xbf16>
    %c0_10 = arith.constant 0 : index
    %c0_11 = arith.constant 0 : index
    %12 = vector.load %arg6[%c0_10, %c0_11] : memref<5x640xbf16, #tpu.memory_space<vmem>>, vector<5x640xbf16>
    %cst_12 = arith.constant dense<0.000000e+00> : vector<64x640xf32>
    %13 = tpu.matmul %11, %12, %cst_12 {dimension_numbers = #tpu.dot_dimension_numbers<[1], [0], [0], [1], [0, 0, 1, 1], [], []>} : vector<64x5xbf16>, vector<5x640xbf16>, vector<64x640xf32> -> vector<64x640xf32>
    %c0_13 = arith.constant 0 : index
    %c0_14 = arith.constant 0 : index
    %c0_15 = arith.constant 0 : index
    %14 = vector.load %arg2[%c0_13, %c0_14, %c0_15] : memref<1x64x64xbf16, #tpu.memory_space<vmem>>, vector<1x64x64xbf16>
    %15 = vector.shape_cast %14 : vector<1x64x64xbf16> to vector<64x64xbf16>
    %16 = vector.extract_strided_slice %13 {offsets = [0, 0], sizes = [64, 128], strides = [1, 1]} : vector<64x640xf32> to vector<64x128xf32>
    %17 = arith.truncf %9 : vector<64x128xf32> to vector<64x128xbf16>
    %cst_16 = arith.constant dense<0.000000e+00> : vector<64x128xf32>
    %18 = tpu.matmul %15, %17, %cst_16 {dimension_numbers = #tpu.dot_dimension_numbers<[1], [0], [0], [1], [0, 0, 1, 1], [], []>} : vector<64x64xbf16>, vector<64x128xbf16>, vector<64x128xf32> -> vector<64x128xf32>
    %19 = arith.addf %18, %16 : vector<64x128xf32>
    %20 = arith.truncf %19 : vector<64x128xf32> to vector<64x128xbf16>
    %c0_17 = arith.constant 0 : index
    %c0_18 = arith.constant 0 : index
    %c0_19 = arith.constant 0 : index
    %21 = vector.load %arg7[%c0_17, %c0_18, %c0_19] : memref<5x128x256xbf16, #tpu.memory_space<vmem>>, vector<1x128x256xbf16>
    %22 = vector.shape_cast %21 : vector<1x128x256xbf16> to vector<128x256xbf16>
    %cst_20 = arith.constant dense<0.000000e+00> : vector<64x256xf32>
    %23 = tpu.matmul %20, %22, %cst_20 {dimension_numbers = #tpu.dot_dimension_numbers<[1], [0], [0], [1], [0, 0, 1, 1], [], []>} : vector<64x128xbf16>, vector<128x256xbf16>, vector<64x256xf32> -> vector<64x256xf32>
    %c0_21 = arith.constant 0 : index
    %c0_22 = arith.constant 0 : index
    %c0_23 = arith.constant 0 : index
    %24 = vector.load %arg8[%c0_21, %c0_22, %c0_23] : memref<5x1x256xf32, #tpu.memory_space<vmem>>, vector<1x1x256xf32>
    %25 = vector.shape_cast %24 : vector<1x1x256xf32> to vector<1x256xf32>
    %26 = vector.broadcast %25 : vector<1x256xf32> to vector<64x256xf32>
    %27 = arith.addf %23, %26 : vector<64x256xf32>
    %cst_24 = arith.constant 0.000000e+00 : f32
    %28 = vector.broadcast %cst_24 : f32 to vector<64x256xf32>
    %29 = arith.maximumf %27, %28 : vector<64x256xf32>
    %30 = arith.truncf %29 : vector<64x256xf32> to vector<64x256xbf16>
    %c0_25 = arith.constant 0 : index
    %c0_26 = arith.constant 0 : index
    %c0_27 = arith.constant 0 : index
    %31 = vector.load %arg9[%c0_25, %c0_26, %c0_27] : memref<5x256x128xbf16, #tpu.memory_space<vmem>>, vector<1x256x128xbf16>
    %32 = vector.shape_cast %31 : vector<1x256x128xbf16> to vector<256x128xbf16>
    %cst_28 = arith.constant dense<0.000000e+00> : vector<64x128xf32>
    %33 = tpu.matmul %30, %32, %cst_28 {dimension_numbers = #tpu.dot_dimension_numbers<[1], [0], [0], [1], [0, 0, 1, 1], [], []>} : vector<64x256xbf16>, vector<256x128xbf16>, vector<64x128xf32> -> vector<64x128xf32>
    %c0_29 = arith.constant 0 : index
    %c0_30 = arith.constant 0 : index
    %c0_31 = arith.constant 0 : index
    %34 = vector.load %arg10[%c0_29, %c0_30, %c0_31] : memref<5x1x128xf32, #tpu.memory_space<vmem>>, vector<1x1x128xf32>
    %35 = vector.shape_cast %34 : vector<1x1x128xf32> to vector<1x128xf32>
    %36 = vector.broadcast %35 : vector<1x128xf32> to vector<64x128xf32>
    %37 = arith.addf %33, %36 : vector<64x128xf32>
    %cst_32 = arith.constant 0.000000e+00 : f32
    %38 = vector.broadcast %cst_32 : f32 to vector<64x128xf32>
    %39 = arith.maximumf %37, %38 : vector<64x128xf32>
    %40 = vector.extract_strided_slice %13 {offsets = [0, 128], sizes = [64, 128], strides = [1, 1]} : vector<64x640xf32> to vector<64x128xf32>
    %41 = arith.truncf %39 : vector<64x128xf32> to vector<64x128xbf16>
    %cst_33 = arith.constant dense<0.000000e+00> : vector<64x128xf32>
    %42 = tpu.matmul %15, %41, %cst_33 {dimension_numbers = #tpu.dot_dimension_numbers<[1], [0], [0], [1], [0, 0, 1, 1], [], []>} : vector<64x64xbf16>, vector<64x128xbf16>, vector<64x128xf32> -> vector<64x128xf32>
    %43 = arith.addf %42, %40 : vector<64x128xf32>
    %44 = arith.truncf %43 : vector<64x128xf32> to vector<64x128xbf16>
    %c1 = arith.constant 1 : index
    %c0_34 = arith.constant 0 : index
    %c0_35 = arith.constant 0 : index
    %45 = vector.load %arg7[%c1, %c0_34, %c0_35] : memref<5x128x256xbf16, #tpu.memory_space<vmem>>, vector<1x128x256xbf16>
    %46 = vector.shape_cast %45 : vector<1x128x256xbf16> to vector<128x256xbf16>
    %cst_36 = arith.constant dense<0.000000e+00> : vector<64x256xf32>
    %47 = tpu.matmul %44, %46, %cst_36 {dimension_numbers = #tpu.dot_dimension_numbers<[1], [0], [0], [1], [0, 0, 1, 1], [], []>} : vector<64x128xbf16>, vector<128x256xbf16>, vector<64x256xf32> -> vector<64x256xf32>
    %c1_37 = arith.constant 1 : index
    %c0_38 = arith.constant 0 : index
    %c0_39 = arith.constant 0 : index
    %48 = vector.load %arg8[%c1_37, %c0_38, %c0_39] : memref<5x1x256xf32, #tpu.memory_space<vmem>>, vector<1x1x256xf32>
    %49 = vector.shape_cast %48 : vector<1x1x256xf32> to vector<1x256xf32>
    %50 = vector.broadcast %49 : vector<1x256xf32> to vector<64x256xf32>
    %51 = arith.addf %47, %50 : vector<64x256xf32>
    %cst_40 = arith.constant 0.000000e+00 : f32
    %52 = vector.broadcast %cst_40 : f32 to vector<64x256xf32>
    %53 = arith.maximumf %51, %52 : vector<64x256xf32>
    %54 = arith.truncf %53 : vector<64x256xf32> to vector<64x256xbf16>
    %c1_41 = arith.constant 1 : index
    %c0_42 = arith.constant 0 : index
    %c0_43 = arith.constant 0 : index
    %55 = vector.load %arg9[%c1_41, %c0_42, %c0_43] : memref<5x256x128xbf16, #tpu.memory_space<vmem>>, vector<1x256x128xbf16>
    %56 = vector.shape_cast %55 : vector<1x256x128xbf16> to vector<256x128xbf16>
    %cst_44 = arith.constant dense<0.000000e+00> : vector<64x128xf32>
    %57 = tpu.matmul %54, %56, %cst_44 {dimension_numbers = #tpu.dot_dimension_numbers<[1], [0], [0], [1], [0, 0, 1, 1], [], []>} : vector<64x256xbf16>, vector<256x128xbf16>, vector<64x128xf32> -> vector<64x128xf32>
    %c1_45 = arith.constant 1 : index
    %c0_46 = arith.constant 0 : index
    %c0_47 = arith.constant 0 : index
    %58 = vector.load %arg10[%c1_45, %c0_46, %c0_47] : memref<5x1x128xf32, #tpu.memory_space<vmem>>, vector<1x1x128xf32>
    %59 = vector.shape_cast %58 : vector<1x1x128xf32> to vector<1x128xf32>
    %60 = vector.broadcast %59 : vector<1x128xf32> to vector<64x128xf32>
    %61 = arith.addf %57, %60 : vector<64x128xf32>
    %cst_48 = arith.constant 0.000000e+00 : f32
    %62 = vector.broadcast %cst_48 : f32 to vector<64x128xf32>
    %63 = arith.maximumf %61, %62 : vector<64x128xf32>
    %64 = vector.extract_strided_slice %13 {offsets = [0, 256], sizes = [64, 128], strides = [1, 1]} : vector<64x640xf32> to vector<64x128xf32>
    %65 = arith.truncf %63 : vector<64x128xf32> to vector<64x128xbf16>
    %cst_49 = arith.constant dense<0.000000e+00> : vector<64x128xf32>
    %66 = tpu.matmul %15, %65, %cst_49 {dimension_numbers = #tpu.dot_dimension_numbers<[1], [0], [0], [1], [0, 0, 1, 1], [], []>} : vector<64x64xbf16>, vector<64x128xbf16>, vector<64x128xf32> -> vector<64x128xf32>
    %67 = arith.addf %66, %64 : vector<64x128xf32>
    %68 = arith.truncf %67 : vector<64x128xf32> to vector<64x128xbf16>
    %c2 = arith.constant 2 : index
    %c0_50 = arith.constant 0 : index
    %c0_51 = arith.constant 0 : index
    %69 = vector.load %arg7[%c2, %c0_50, %c0_51] : memref<5x128x256xbf16, #tpu.memory_space<vmem>>, vector<1x128x256xbf16>
    %70 = vector.shape_cast %69 : vector<1x128x256xbf16> to vector<128x256xbf16>
    %cst_52 = arith.constant dense<0.000000e+00> : vector<64x256xf32>
    %71 = tpu.matmul %68, %70, %cst_52 {dimension_numbers = #tpu.dot_dimension_numbers<[1], [0], [0], [1], [0, 0, 1, 1], [], []>} : vector<64x128xbf16>, vector<128x256xbf16>, vector<64x256xf32> -> vector<64x256xf32>
    %c2_53 = arith.constant 2 : index
    %c0_54 = arith.constant 0 : index
    %c0_55 = arith.constant 0 : index
    %72 = vector.load %arg8[%c2_53, %c0_54, %c0_55] : memref<5x1x256xf32, #tpu.memory_space<vmem>>, vector<1x1x256xf32>
    %73 = vector.shape_cast %72 : vector<1x1x256xf32> to vector<1x256xf32>
    %74 = vector.broadcast %73 : vector<1x256xf32> to vector<64x256xf32>
    %75 = arith.addf %71, %74 : vector<64x256xf32>
    %cst_56 = arith.constant 0.000000e+00 : f32
    %76 = vector.broadcast %cst_56 : f32 to vector<64x256xf32>
    %77 = arith.maximumf %75, %76 : vector<64x256xf32>
    %78 = arith.truncf %77 : vector<64x256xf32> to vector<64x256xbf16>
    %c2_57 = arith.constant 2 : index
    %c0_58 = arith.constant 0 : index
    %c0_59 = arith.constant 0 : index
    %79 = vector.load %arg9[%c2_57, %c0_58, %c0_59] : memref<5x256x128xbf16, #tpu.memory_space<vmem>>, vector<1x256x128xbf16>
    %80 = vector.shape_cast %79 : vector<1x256x128xbf16> to vector<256x128xbf16>
    %cst_60 = arith.constant dense<0.000000e+00> : vector<64x128xf32>
    %81 = tpu.matmul %78, %80, %cst_60 {dimension_numbers = #tpu.dot_dimension_numbers<[1], [0], [0], [1], [0, 0, 1, 1], [], []>} : vector<64x256xbf16>, vector<256x128xbf16>, vector<64x128xf32> -> vector<64x128xf32>
    %c2_61 = arith.constant 2 : index
    %c0_62 = arith.constant 0 : index
    %c0_63 = arith.constant 0 : index
    %82 = vector.load %arg10[%c2_61, %c0_62, %c0_63] : memref<5x1x128xf32, #tpu.memory_space<vmem>>, vector<1x1x128xf32>
    %83 = vector.shape_cast %82 : vector<1x1x128xf32> to vector<1x128xf32>
    %84 = vector.broadcast %83 : vector<1x128xf32> to vector<64x128xf32>
    %85 = arith.addf %81, %84 : vector<64x128xf32>
    %cst_64 = arith.constant 0.000000e+00 : f32
    %86 = vector.broadcast %cst_64 : f32 to vector<64x128xf32>
    %87 = arith.maximumf %85, %86 : vector<64x128xf32>
    %88 = vector.extract_strided_slice %13 {offsets = [0, 384], sizes = [64, 128], strides = [1, 1]} : vector<64x640xf32> to vector<64x128xf32>
    %89 = arith.truncf %87 : vector<64x128xf32> to vector<64x128xbf16>
    %cst_65 = arith.constant dense<0.000000e+00> : vector<64x128xf32>
    %90 = tpu.matmul %15, %89, %cst_65 {dimension_numbers = #tpu.dot_dimension_numbers<[1], [0], [0], [1], [0, 0, 1, 1], [], []>} : vector<64x64xbf16>, vector<64x128xbf16>, vector<64x128xf32> -> vector<64x128xf32>
    %91 = arith.addf %90, %88 : vector<64x128xf32>
    %92 = arith.truncf %91 : vector<64x128xf32> to vector<64x128xbf16>
    %c3 = arith.constant 3 : index
    %c0_66 = arith.constant 0 : index
    %c0_67 = arith.constant 0 : index
    %93 = vector.load %arg7[%c3, %c0_66, %c0_67] : memref<5x128x256xbf16, #tpu.memory_space<vmem>>, vector<1x128x256xbf16>
    %94 = vector.shape_cast %93 : vector<1x128x256xbf16> to vector<128x256xbf16>
    %cst_68 = arith.constant dense<0.000000e+00> : vector<64x256xf32>
    %95 = tpu.matmul %92, %94, %cst_68 {dimension_numbers = #tpu.dot_dimension_numbers<[1], [0], [0], [1], [0, 0, 1, 1], [], []>} : vector<64x128xbf16>, vector<128x256xbf16>, vector<64x256xf32> -> vector<64x256xf32>
    %c3_69 = arith.constant 3 : index
    %c0_70 = arith.constant 0 : index
    %c0_71 = arith.constant 0 : index
    %96 = vector.load %arg8[%c3_69, %c0_70, %c0_71] : memref<5x1x256xf32, #tpu.memory_space<vmem>>, vector<1x1x256xf32>
    %97 = vector.shape_cast %96 : vector<1x1x256xf32> to vector<1x256xf32>
    %98 = vector.broadcast %97 : vector<1x256xf32> to vector<64x256xf32>
    %99 = arith.addf %95, %98 : vector<64x256xf32>
    %cst_72 = arith.constant 0.000000e+00 : f32
    %100 = vector.broadcast %cst_72 : f32 to vector<64x256xf32>
    %101 = arith.maximumf %99, %100 : vector<64x256xf32>
    %102 = arith.truncf %101 : vector<64x256xf32> to vector<64x256xbf16>
    %c3_73 = arith.constant 3 : index
    %c0_74 = arith.constant 0 : index
    %c0_75 = arith.constant 0 : index
    %103 = vector.load %arg9[%c3_73, %c0_74, %c0_75] : memref<5x256x128xbf16, #tpu.memory_space<vmem>>, vector<1x256x128xbf16>
    %104 = vector.shape_cast %103 : vector<1x256x128xbf16> to vector<256x128xbf16>
    %cst_76 = arith.constant dense<0.000000e+00> : vector<64x128xf32>
    %105 = tpu.matmul %102, %104, %cst_76 {dimension_numbers = #tpu.dot_dimension_numbers<[1], [0], [0], [1], [0, 0, 1, 1], [], []>} : vector<64x256xbf16>, vector<256x128xbf16>, vector<64x128xf32> -> vector<64x128xf32>
    %c3_77 = arith.constant 3 : index
    %c0_78 = arith.constant 0 : index
    %c0_79 = arith.constant 0 : index
    %106 = vector.load %arg10[%c3_77, %c0_78, %c0_79] : memref<5x1x128xf32, #tpu.memory_space<vmem>>, vector<1x1x128xf32>
    %107 = vector.shape_cast %106 : vector<1x1x128xf32> to vector<1x128xf32>
    %108 = vector.broadcast %107 : vector<1x128xf32> to vector<64x128xf32>
    %109 = arith.addf %105, %108 : vector<64x128xf32>
    %cst_80 = arith.constant 0.000000e+00 : f32
    %110 = vector.broadcast %cst_80 : f32 to vector<64x128xf32>
    %111 = arith.maximumf %109, %110 : vector<64x128xf32>
    %112 = vector.extract_strided_slice %13 {offsets = [0, 512], sizes = [64, 128], strides = [1, 1]} : vector<64x640xf32> to vector<64x128xf32>
    %113 = arith.truncf %111 : vector<64x128xf32> to vector<64x128xbf16>
    %cst_81 = arith.constant dense<0.000000e+00> : vector<64x128xf32>
    %114 = tpu.matmul %15, %113, %cst_81 {dimension_numbers = #tpu.dot_dimension_numbers<[1], [0], [0], [1], [0, 0, 1, 1], [], []>} : vector<64x64xbf16>, vector<64x128xbf16>, vector<64x128xf32> -> vector<64x128xf32>
    %115 = arith.addf %114, %112 : vector<64x128xf32>
    %116 = arith.truncf %115 : vector<64x128xf32> to vector<64x128xbf16>
    %c4 = arith.constant 4 : index
    %c0_82 = arith.constant 0 : index
    %c0_83 = arith.constant 0 : index
    %117 = vector.load %arg7[%c4, %c0_82, %c0_83] : memref<5x128x256xbf16, #tpu.memory_space<vmem>>, vector<1x128x256xbf16>
    %118 = vector.shape_cast %117 : vector<1x128x256xbf16> to vector<128x256xbf16>
    %cst_84 = arith.constant dense<0.000000e+00> : vector<64x256xf32>
    %119 = tpu.matmul %116, %118, %cst_84 {dimension_numbers = #tpu.dot_dimension_numbers<[1], [0], [0], [1], [0, 0, 1, 1], [], []>} : vector<64x128xbf16>, vector<128x256xbf16>, vector<64x256xf32> -> vector<64x256xf32>
    %c4_85 = arith.constant 4 : index
    %c0_86 = arith.constant 0 : index
    %c0_87 = arith.constant 0 : index
    %120 = vector.load %arg8[%c4_85, %c0_86, %c0_87] : memref<5x1x256xf32, #tpu.memory_space<vmem>>, vector<1x1x256xf32>
    %121 = vector.shape_cast %120 : vector<1x1x256xf32> to vector<1x256xf32>
    %122 = vector.broadcast %121 : vector<1x256xf32> to vector<64x256xf32>
    %123 = arith.addf %119, %122 : vector<64x256xf32>
    %cst_88 = arith.constant 0.000000e+00 : f32
    %124 = vector.broadcast %cst_88 : f32 to vector<64x256xf32>
    %125 = arith.maximumf %123, %124 : vector<64x256xf32>
    %126 = arith.truncf %125 : vector<64x256xf32> to vector<64x256xbf16>
    %c4_89 = arith.constant 4 : index
    %c0_90 = arith.constant 0 : index
    %c0_91 = arith.constant 0 : index
    %127 = vector.load %arg9[%c4_89, %c0_90, %c0_91] : memref<5x256x128xbf16, #tpu.memory_space<vmem>>, vector<1x256x128xbf16>
    %128 = vector.shape_cast %127 : vector<1x256x128xbf16> to vector<256x128xbf16>
    %cst_92 = arith.constant dense<0.000000e+00> : vector<64x128xf32>
    %129 = tpu.matmul %126, %128, %cst_92 {dimension_numbers = #tpu.dot_dimension_numbers<[1], [0], [0], [1], [0, 0, 1, 1], [], []>} : vector<64x256xbf16>, vector<256x128xbf16>, vector<64x128xf32> -> vector<64x128xf32>
    %c4_93 = arith.constant 4 : index
    %c0_94 = arith.constant 0 : index
    %c0_95 = arith.constant 0 : index
    %130 = vector.load %arg10[%c4_93, %c0_94, %c0_95] : memref<5x1x128xf32, #tpu.memory_space<vmem>>, vector<1x1x128xf32>
    %131 = vector.shape_cast %130 : vector<1x1x128xf32> to vector<1x128xf32>
    %132 = vector.broadcast %131 : vector<1x128xf32> to vector<64x128xf32>
    %133 = arith.addf %129, %132 : vector<64x128xf32>
    %c0_96 = arith.constant 0 : index
    %c0_97 = arith.constant 0 : index
    %134 = vector.load %arg11[%c0_96, %c0_97] : memref<4x64xf32, #tpu.memory_space<vmem>>, vector<4x64xf32>
    %cst_98 = arith.constant dense<0.000000e+00> : vector<4x128xf32>
    %135 = tpu.matmul %134, %133, %cst_98 {dimension_numbers = #tpu.dot_dimension_numbers<[1], [0], [0], [1], [0, 0, 1, 1], [], []>} : vector<4x64xf32>, vector<64x128xf32>, vector<4x128xf32> -> vector<4x128xf32>
    %c0_99 = arith.constant 0 : index
    %c0_100 = arith.constant 0 : index
    %c0_101 = arith.constant 0 : index
    %136 = vector.load %arg12[%c0_99, %c0_100, %c0_101] : memref<1x4x128xf32, #tpu.memory_space<vmem>>, vector<1x4x128xf32>
    %137 = vector.shape_cast %136 : vector<1x4x128xf32> to vector<4x128xf32>
    %138 = vector.shape_cast %135 : vector<4x128xf32> to vector<1x4x128xf32>
    tpu.vector_store %arg12[%c0_99, %c0_100, %c0_101], %138 {strides = array<i32>} : memref<1x4x128xf32, #tpu.memory_space<vmem>>, vector<1x4x128xf32>,
    return
  }
  func.func @transform_0(%arg0: i32) -> (i32, i32, i32) {
    %c0_i32 = arith.constant 0 : i32
    %c0_i32_0 = arith.constant 0 : i32
    %c0_i32_1 = arith.constant 0 : i32
    return %arg0, %c0_i32, %c0_i32_0 : i32, i32, i32
  }
  func.func @transform_1(%arg0: i32) -> (i32, i32, i32) {
    %c0_i32 = arith.constant 0 : i32
    %c0_i32_0 = arith.constant 0 : i32
    %c0_i32_1 = arith.constant 0 : i32
    return %arg0, %c0_i32, %c0_i32_0 : i32, i32, i32
  }
  func.func @transform_2(%arg0: i32) -> (i32, i32, i32) {
    %c0_i32 = arith.constant 0 : i32
    %c0_i32_0 = arith.constant 0 : i32
    %c0_i32_1 = arith.constant 0 : i32
    return %arg0, %c0_i32, %c0_i32_0 : i32, i32, i32
  }
  func.func @transform_3(%arg0: i32) -> (i32, i32) {
    %c0_i32 = arith.constant 0 : i32
    %c0_i32_0 = arith.constant 0 : i32
    %c0_i32_1 = arith.constant 0 : i32
    return %c0_i32, %c0_i32_0 : i32, i32
  }
  func.func @transform_4(%arg0: i32) -> (i32, i32) {
    %c0_i32 = arith.constant 0 : i32
    %c0_i32_0 = arith.constant 0 : i32
    %c0_i32_1 = arith.constant 0 : i32
    return %c0_i32, %c0_i32_0 : i32, i32
  }
  func.func @transform_5(%arg0: i32) -> (i32, i32) {
    %c0_i32 = arith.constant 0 : i32
    %c0_i32_0 = arith.constant 0 : i32
    %c0_i32_1 = arith.constant 0 : i32
    return %c0_i32, %c0_i32_0 : i32, i32
  }
  func.func @transform_6(%arg0: i32) -> (i32, i32, i32) {
    %c0_i32 = arith.constant 0 : i32
    %c0_i32_0 = arith.constant 0 : i32
    %c0_i32_1 = arith.constant 0 : i32
    %c0_i32_2 = arith.constant 0 : i32
    return %c0_i32, %c0_i32_0, %c0_i32_1 : i32, i32, i32
  }
  func.func @transform_7(%arg0: i32) -> (i32, i32, i32) {
    %c0_i32 = arith.constant 0 : i32
    %c0_i32_0 = arith.constant 0 : i32
    %c0_i32_1 = arith.constant 0 : i32
    %c0_i32_2 = arith.constant 0 : i32
    return %c0_i32, %c0_i32_0, %c0_i32_1 : i32, i32, i32
  }
  func.func @transform_8(%arg0: i32) -> (i32, i32, i32) {
    %c0_i32 = arith.constant 0 : i32
    %c0_i32_0 = arith.constant 0 : i32
    %c0_i32_1 = arith.constant 0 : i32
    %c0_i32_2 = arith.constant 0 : i32
    return %c0_i32, %c0_i32_0, %c0_i32_1 : i32, i32, i32
  }
  func.func @transform_9(%arg0: i32) -> (i32, i32, i32) {
    %c0_i32 = arith.constant 0 : i32
    %c0_i32_0 = arith.constant 0 : i32
    %c0_i32_1 = arith.constant 0 : i32
    %c0_i32_2 = arith.constant 0 : i32
    return %c0_i32, %c0_i32_0, %c0_i32_1 : i32, i32, i32
  }
  func.func @transform_10(%arg0: i32) -> (i32, i32) {
    %c0_i32 = arith.constant 0 : i32
    %c0_i32_0 = arith.constant 0 : i32
    %c0_i32_1 = arith.constant 0 : i32
    return %c0_i32, %c0_i32_0 : i32, i32
  }
  func.func @transform_11(%arg0: i32) -> (i32, i32, i32) {
    %c0_i32 = arith.constant 0 : i32
    %c0_i32_0 = arith.constant 0 : i32
    %c0_i32_1 = arith.constant 0 : i32
    return %arg0, %c0_i32, %c0_i32_0 : i32, i32, i32
  }
}

</mosaic_0001>

<bundles_post_ra>
// kernel: gin_forward.1
= control target key start
LH: loop header
LB: loop body
LE: loop exit
PB: predicated region body
PF: predicated region fallthrough
CT: control target
= control target key end

     0   :  { %s5649_s0 = inlined_call_operand.vmem [shape: f32[2,64,128], index: 0, kind: input, shape index: {}]   ;;  %s5650_s1 = inlined_call_operand.vmem [shape: bf16[2,64,64], index: 1, kind: input, shape index: {}]   ;;  %s5651_s2 = inlined_call_operand.vmem [shape: bf16[2,64,5], index: 2, kind: input, shape index: {}]   ;;  %s5652_s3 = inlined_call_operand.vmem [shape: bf16[128,128], index: 3, kind: input, shape index: {}]   ;;  %s5653_s4 = inlined_call_operand.vmem [shape: f32[1,128], index: 4, kind: input, shape index: {}]   ;;  %s5654_s5 = inlined_call_operand.vmem [shape: bf16[5,640], index: 5, kind: input, shape index: {}]   ;;  %s5655_s6 = inlined_call_operand.vmem [shape: bf16[5,128,256], index: 6, kind: input, shape index: {}]   ;;  %s5656_s7 = inlined_call_operand.vmem [shape: f32[5,1,256], index: 7, kind: input, shape index: {}]   ;;  %s5657_s8 = inlined_call_operand.vmem [shape: bf16[5,256,128], index: 8, kind: input, shape index: {}]   ;;  %s5658_s9 = inlined_call_operand.vmem [shape: f32[5,1,128], index: 9, kind: input, shape index: {}]   ;;  %s5659_s10 = inlined_call_operand.vmem [shape: f32[4,64], index: 10, kind: input, shape index: {}]   ;;  %s5660_s11 = inlined_call_operand.hbm [shape: f32[2,4,128], index: 11, kind: output, shape index: {}]  }
   0x1   :  { %5661 = sst [smem:[#allocation5_spill]] %s5649_s0 }
   0x2   :  { %16 = vsyncpa [#allocation3], 0 }
   0x3   :  { %18 = vsyncpa [#allocation3 + $0x1], 0  ;;  %s4776_s17 = smov 0   ;;  %s4778_s18 = smov 0  }
   0x4   :  { %s4780_s19 = smov 0   ;;  %s4782_s20 = smov 0  }
   0x5 LB: > { %s4797_s21 = sadd.s32 4294967295, %s4708_s20   ;;  %s3520_s22 = sadd.s32 4294967294, %s4708_s20   ;;  %s4708_s20 = sphi %s4782_s20, %s5668_s20   ;;  %s4704_s19 = sphi %s4780_s19, %s5667_s19   ;;  %s4700_s18 = sphi %s4778_s18, %s5666_s18   ;;  %s4696_s17 = sphi %s4776_s17, %s5665_s17  }
   0x6   : > { %s4801_s23 = sadd.s32 1, %s4708_s20   ;;  %s277_s24 = sadd.s32 1, %s4704_s19 }
   0x7   : > { %s274_s25 = ssub.s32 %s4708_s20, %s4801_s23  ;;  %p287_p0 = scmp.ne.s32.totalorder %s4704_s19, %s4700_s18 }
   0x8   : > { %p275_p1 = scmp.eq.s32.totalorder %s274_s25, 0  ;;  %p288_p2 = scmp.eq.s32.totalorder %s4797_s21, 1 }
   0x9   : > { %p293_p3 = scmp.ne.s32.totalorder %s4700_s18, %s4696_s17  ;;  %p294_p4 = scmp.eq.s32.totalorder %s3520_s22, 1 }
   0xa   : > { %s4812_s26 = scalar_select %p275_p1, %s4704_s19, %s277_s24  }
   0xb   : > { %p4814_p5 = por %p288_p2, %p287_p0  ;;  %p4818_p6 = por %p294_p4, %p293_p3 }
   0xc   : > { %p3523_p7 = scmp.ge.s32.totalorder %s4708_s20, 1  ;;  %p360_p8 = scmp.lt.s32.totalorder %s4708_s20, 3 }
   0xe   : > { %p361_p9 = pnand %p3523_p7, %p360_p8 }
   0xf   : > { %v4421_v0 = vld [vmem:[%s5652_s3] sm:$0xff] (!%p361_p9)   ;;  %p410_p10 = scmp.lt.s32.totalorder (!%p361_p9), %s4797_s21, 1  ;;  %v4422_v1 = vld [vmem:[%s5652_s3 + $0x8] sm:$0xff] (!%p361_p9)   ;;  %v4423_v2 = vld [vmem:[%s5652_s3 + $0x10] sm:$0xff] (!%p361_p9)   ;;  %s5664_s0 = sld [smem:[#allocation5_spill]] (!%p361_p9)  ;;  %vm639_vm0 = vcmask (!%p361_p9), 1041408  }
  0x10   : > { %364 = sbr.rel (%p361_p9) target bundleno = 3964 (0xf7c), region = 64  ;;  %4224 = vmatprep.subr.bf16.mxu0 (!%p361_p9), %v4421_v0  ;;  %v4424_v3 = vld [vmem:[%s5652_s3 + $0x18] sm:$0xff] (!%p361_p9)   ;;  %v4425_v9 = vld [vmem:[%s5652_s3 + $0x20] sm:$0xff] (!%p361_p9)   ;;  %vm640_vm1 = vcmask (!%p361_p9), 1042432   ;;  %v4426_v10 = vld [vmem:[%s5652_s3 + $0x28] sm:$0xff] (!%p361_p9)   ;;  %v4710_v15 = vmov (!%p361_p9), 65535  }
  0x11   : > { %4225 = vmatpush3.bf16.msra.mxu0 (!%p361_p9), %v4421_v0  ;;  %v641_v16 = vsel (!%p361_p9), %vm639_vm0, 4294967295, %v4710_v15  ;;  %v4427_v17 = vld [vmem:[%s5652_s3 + $0x30] sm:$0xff] (!%p361_p9)   ;;  %v4428_v22 = vld [vmem:[%s5652_s3 + $0x38] sm:$0xff] (!%p361_p9)   ;;  %v590_v34 = vld [vmem:[%s5654_s5] sm:$0x77] (!%p361_p9)  ;;  %vm626_vm2 = vcmask (!%p361_p9), 39936  }
  0x12   : > { %4226 = vmatprep.subr.bf16.mxu0 (!%p361_p9), %v4422_v1  ;;  %v642_v18 = vsel (!%p361_p9), %vm640_vm1, %v641_v16, 0  ;;  %v4429_v24 = vld [vmem:[%s5654_s5 + $0x10] ss:$0 sps:$4 sm:$0x77] (!%p361_p9)   ;;  %v3545_v36 = vcombine.high (!%p361_p9), %v590_v34, %v590_v34  ;;  %v3544_v37 = vcombine.low (!%p361_p9), %v590_v34, %v590_v34  ;;  %v4711_v40 = vmov (!%p361_p9), 0   ;;  %s407_s24 = sand.u32 (!%p361_p9), 1, %s4700_s18  }
  0x13   : > { %v656_v25 = vand.u32 (!%p361_p9), %v4429_v24, %v642_v18  ;;  %690 = vmatprep.mubr.bf16.mxu1 (!%p361_p9), %v4711_v40  ;;  %vm901_vm3 = vcmask (!%p361_p9), 523264   ;;  %v591_v44 = vld [vmem:[%s5654_s5 + $0x8] sm:$0x77] (!%p361_p9)  ;;  %v4447_v51 = vld [vmem:[%s5655_s6 + $0x14] ss:$8 sps:$4 sm:$0xff] (!%p361_p9)   ;;  %vm4713_vm4 = vmmov (!%p361_p9), 0  }
  0x14   : > { %v647_v38 = vand.u32 (!%p361_p9), %v3545_v36, %v642_v18  ;;  %v644_v39 = vand.u32 (!%p361_p9), %v3544_v37, %v642_v18  ;;  %v3546_v45 = vcombine.low (!%p361_p9), %v591_v44, %v591_v44  ;;  %v3547_v46 = vcombine.high (!%p361_p9), %v591_v44, %v591_v44  ;;  %v4444_v49 = vld [vmem:[%s5655_s6 + $0x4] ss:$8 sps:$4 sm:$0xff] (!%p361_p9)   ;;  %v4442_v50 = vld [vmem:[%s5655_s6] ss:$8 sps:$4 sm:$0xff] (!%p361_p9)   ;;  %v4445_v52 = vld [vmem:[%s5655_s6 + $0x10] ss:$8 sps:$4 sm:$0xff] (!%p361_p9)  }
  0x15   : > { %4227 = vmatpush3.bf16.msra.mxu0 (!%p361_p9), %v4422_v1  ;;  %v4450_v53 = vld [vmem:[%s5655_s6 + $0x24] ss:$8 sps:$4 sm:$0xff] (!%p361_p9)   ;;  %v4448_v54 = vld [vmem:[%s5655_s6 + $0x20] ss:$8 sps:$4 sm:$0xff] (!%p361_p9)   ;;  %v4453_v55 = vld [vmem:[%s5655_s6 + $0x34] ss:$8 sps:$4 sm:$0xff] (!%p361_p9)  }
  0x16   : > { %4228 = vmatprep.subr.bf16.mxu0 (!%p361_p9), %v4423_v2  ;;  %658 = vmatprep.subr.bf16.mxu1 (!%p361_p9), %v647_v38  ;;  %v653_v47 = vand.u32 (!%p361_p9), %v3547_v46, %v642_v18  ;;  %v650_v48 = vand.u32 (!%p361_p9), %v3546_v45, %v642_v18  ;;  %v4451_v56 = vld [vmem:[%s5655_s6 + $0x30] ss:$8 sps:$4 sm:$0xff] (!%p361_p9)   ;;  %v4456_v57 = vld [vmem:[%s5655_s6 + $0x44] ss:$8 sps:$4 sm:$0xff] (!%p361_p9)   ;;  %v4454_v58 = vld [vmem:[%s5655_s6 + $0x40] ss:$8 sps:$4 sm:$0xff] (!%p361_p9)  }
  0x17   : > { %s411_s14 = scalar_select %p410_p10, %s4797_s21, 1  ;;  %659 = vmatpush1.bf16.msra.mxu1 %v644_v39  ;;  %v4457_v59 = vld [vmem:[%s5655_s6 + $0x50] ss:$8 sps:$4 sm:$0xff]   ;;  %v4459_v60 = vld [vmem:[%s5655_s6 + $0x54] ss:$8 sps:$4 sm:$0xff]   ;;  %v4466_v44 = vld [vmem:[%s5657_s8 + $0x40] sm:$0xff]  }
  0x18   : > { %731 = vmatprep.subr.bf16.mxu1 %v653_v47  ;;  %v3531_v62 = vld [vmem:[%s5653_s4] ss:$0 sm:$0xff]  ;;  %v4468_v46 = vld [vmem:[%s5657_s8 + $0x48] sm:$0xff]   ;;  %s3524_s25 = sshll.u32 %s407_s24, 2  ;;  %s3952_s13 = sshll.u32 %s4797_s21, 6 }
  0x19   : > { %s3955_s22 = sshll.u32 %s411_s14, 6  ;;  %s3956_s30 = sshll.u32 %s411_s14, 5  ;;  %4229 = vmatpush3.bf16.msra.mxu0 %v4423_v2  ;;  %v4467_v45 = vld [vmem:[%s5657_s8] sm:$0xff]  }
  0x1a   : > { %s4838_s29 = scalar_lea.vmem %s5664_s0, %s3955_s22  ;;  %s4848_s22 = scalar_lea.vmem %s5651_s2, %s3956_s30  ;;  %4230 = vmatprep.subr.bf16.mxu0 %v4424_v3 }
  0x1b   : > { %v426_v4 = vld [vmem:[%s4838_s29] sm:$0xff]  ;;  %v427_v5 = vld [vmem:[%s4838_s29 + $0x8] sm:$0xff]  ;;  %s4859_s15 = scalar_lea.vmem %s5650_s1, %s3956_s30  ;;  %v428_v11 = vld [vmem:[%s4838_s29 + $0x10] sm:$0xff]  ;;  %s409_s12 = scalar_lea.vmem [#allocation2], %s3524_s25 }
  0x1c   : > { %v434_v6 = vmax.f32 %v426_v4, 0.0  ;;  %v435_v7 = vmax.f32 %v427_v5, 0.0  ;;  %v429_v12 = vld [vmem:[%s4838_s29 + $0x18] sm:$0xff]  ;;  %v430_v13 = vld [vmem:[%s4838_s29 + $0x20] sm:$0xff]  ;;  %v431_v14 = vld [vmem:[%s4838_s29 + $0x28] sm:$0xff]  ;;  %v436_v19 = vmax.f32 %v428_v11, 0.0  ;;  %s5609_s16 = scalar_lea.hbm %s5660_s11, %s3952_s13 }
  0x1d   : > { %4231 = vmatpush3.bf16.msra.mxu0 %v4424_v3  ;;  %v437_v20 = vmax.f32 %v429_v12, 0.0  ;;  %v438_v21 = vmax.f32 %v430_v13, 0.0  ;;  %v439_v23 = vmax.f32 %v431_v14, 0.0  ;;  %v432_v26 = vld [vmem:[%s4838_s29 + $0x30] sm:$0xff]  ;;  %v433_v27 = vld [vmem:[%s4838_s29 + $0x38] sm:$0xff]  ;;  %v4430_v33 = vld [vmem:[%s4848_s22] sm:$0xff]  }
  0x1e   : > { %v442_v8 = vpack.c.bf16 %v435_v7, %v434_v6  ;;  %4232 = vmatprep.subr.bf16.mxu0 %v4425_v9  ;;  %v440_v30 = vmax.f32 %v432_v26, 0.0  ;;  %v441_v31 = vmax.f32 %v433_v27, 0.0  ;;  %v4431_v35 = vld [vmem:[%s4848_s22 + $0x8] sm:$0xff]   ;;  %v4434_v41 = vld [vmem:[%s4848_s22 + $0x10] sm:$0xff]   ;;  %3549 = vmatmul.mubr.msk.bf16.vlgmr.msra.gmra.mrb[0].mxu1 %vm626_vm2, %v4430_v33  ;;  %v4435_v42 = vld [vmem:[%s4848_s22 + $0x18] sm:$0xff]   ;;  %s3424_s14 = scalar_lea.sflag [#allocation3], %s407_s24 }
  0x1f   : > { %v443_v28 = vpack.c.bf16 %v437_v20, %v436_v19  ;;  %v444_v29 = vpack.c.bf16 %v439_v23, %v438_v21  ;;  %700 = vmatprep.mubr.bf16.mxu1 %v4711_v40  ;;  %v4891_v43 = vld [vmem:[%s4859_s15] sm:$0xff]   ;;  %732 = vmatpush1.bf16.msra.mxu1 %v650_v48  ;;  %v4952_v18 = vld [vmem:[%s4859_s15 + $0x8] sm:$0xff]   ;;  %v4955_v19 = vld [vmem:[%s4859_s15 + $0x10] sm:$0xff]   ;;  %s4715_s21 = smov [#allocation2]  }
  0x20   : > { %4240 = vmatprep.mubr.bf16.mxu0 %v442_v8  ;;  %v445_v32 = vpack.c.bf16 %v441_v31, %v440_v30  ;;  %1091 = vmatprep.subr.bf16.mxu1 %v4444_v49  ;;  %v4962_v20 = vld [vmem:[%s4859_s15 + $0x18] sm:$0xff]   ;;  %v4462_v26 = vld [vmem:[%s5655_s6 + $0x64] ss:$8 sps:$4 sm:$0xff]   ;;  %v4460_v27 = vld [vmem:[%s5655_s6 + $0x60] ss:$8 sps:$4 sm:$0xff]   ;;  %s4650_s30 = sshll.u32 %s4715_s21, 4  ;;  %s4651_s30 = int_to_ptr.vmem [resolvable:$false] %s4650_s30 }
  0x21   : > { %4233 = vmatpush3.bf16.msra.mxu0 %v4425_v9  ;;  %v4465_v30 = vld [vmem:[%s5655_s6 + $0x74] ss:$8 sps:$4 sm:$0xff]   ;;  %v4463_v31 = vld [vmem:[%s5655_s6 + $0x70] ss:$8 sps:$4 sm:$0xff]   ;;  %s4652_s25 = scalar_lea.vmem %s4651_s30, 128 }
  0x22   : > { %4234 = vmatprep.subr.bf16.mxu0 %v4426_v10 }
  0x25   : > { %4235 = vmatpush3.bf16.msra.mxu0 %v4426_v10 }
  0x26   : > { %4236 = vmatprep.subr.bf16.mxu0 %v4427_v17  ;;  %3550 = vmatmul.mubr.msk.bf16.gmra.mrb[4].mxu1 %vm626_vm2, %v4431_v35 }
  0x27   : > { %710 = vmatprep.mubr.bf16.mxu1 %v4711_v40 }
  0x29   : > { %4237 = vmatpush3.bf16.msra.mxu0 %v4427_v17 }
  0x2a   : > { %4238 = vmatprep.subr.bf16.mxu0 %v4428_v22 }
  0x2d   : > { %4239 = vmatpush3.bf16.msra.mxu0 %v4428_v22 }
  0x2e   : > { %4248 = vmatprep.subr.bf16.mxu0 %v656_v25  ;;  %3551 = vmatmul.mubr.msk.bf16.gmra.mrb[8].mxu1 %vm626_vm2, %v4434_v41 }
  0x2f   : > { %720 = vmatprep.mubr.bf16.mxu1 %v4711_v40 }
  0x30   : > { %4241 = vmatmul.mubr.bf16.vlgmr.msra.gmra.mrb[0].mxu0 %v443_v28 }
  0x31   : > { %4244 = vmatprep.mubr.bf16.mxu0 %v444_v29  ;;  %4249 = vmatpush3.bf16.msra.mxu0 %v656_v25 }
  0x36   : > { %3552 = vmatmul.mubr.msk.bf16.gmra.mrb[12].mxu1 %vm626_vm2, %v4435_v42 }
  0x37   : > { %763 = vmatprep.mubr.bf16.mxu1 %v4711_v40 }
  0x38   : > { %4245 = vmatmul.mubr.bf16.gmra.mrb[4].mxu0 %v445_v32 }
  0x39   : > { %4250 = vmatprep.mubr.msk.bf16.mxu0 %vm626_vm2, %v4430_v33 }
  0x3e   : > { %3553 = vmatmul.mubr.msk.bf16.vlgmr.msra.gmra.mrb[16].mxu1 %vm626_vm2, %v4430_v33 }
  0x3f   : > { %1092 = vmatpush1.bf16.msra.mxu1 %v4442_v50  ;;  %773 = vmatprep.mubr.bf16.mxu1 %v4711_v40  ;;  %v4469_v50 = vld [vmem:[%s5657_s8 + $0x8] sm:$0xff]  }
  0x40   : > { %4251 = vmatmul.mubr.msk.bf16.vlgmr.msra.gmra.mrb[8].mxu0 %vm626_vm2, %v4431_v35  ;;  %1093 = vmatprep.subr.bf16.mxu1 %v4447_v51 }
  0x41   : > { %4254 = vmatprep.mubr.msk.bf16.mxu0 %vm626_vm2, %v4434_v41 }
  0x43   : > { %1094 = vmatpush1.bf16.msra.mxu1 %v4445_v52  ;;  %v4470_v52 = vld [vmem:[%s5657_s8 + $0x50] sm:$0xff]  }
  0x44   : > { %1095 = vmatprep.subr.bf16.mxu1 %v4450_v53 }
  0x46   : > { %3554 = vmatmul.mubr.msk.bf16.gmra.mrb[20].mxu1 %vm626_vm2, %v4431_v35 }
  0x47   : > { %1096 = vmatpush1.bf16.msra.mxu1 %v4448_v54  ;;  %783 = vmatprep.mubr.bf16.mxu1 %v4711_v40 }
  0x48   : > { %4255 = vmatmul.mubr.msk.bf16.gmra.mrb[12].mxu0 %vm626_vm2, %v4435_v42  ;;  %1097 = vmatprep.subr.bf16.mxu1 %v4453_v55 }
  0x49   : > { %4266 = vmatprep.mubr.msk.bf16.mxu0 %vm901_vm3, %v4891_v43 }
  0x4b   : > { %1098 = vmatpush1.bf16.msra.mxu1 %v4451_v56  ;;  %v4471_v56 = vld [vmem:[%s5657_s8 + $0x10] sm:$0xff]  }
  0x4c   : > { %1099 = vmatprep.subr.bf16.mxu1 %v4456_v57 }
  0x4e   : > { %3555 = vmatmul.mubr.msk.bf16.gmra.mrb[24].mxu1 %vm626_vm2, %v4434_v41 }
  0x4f   : > { %1100 = vmatpush1.bf16.msra.mxu1 %v4454_v58  ;;  %793 = vmatprep.mubr.bf16.mxu1 %v4711_v40  ;;  %v4472_v58 = vld [vmem:[%s5657_s8 + $0x58] sm:$0xff]  }
  0x50   : > { %1101 = vmatprep.subr.bf16.mxu1 %v4459_v60 }
  0x53   : > { %1102 = vmatpush1.bf16.msra.mxu1 %v4457_v59 }
  0x54   : > { %1103 = vmatprep.subr.bf16.mxu1 %v4462_v26 }
  0x56   : > { %3556 = vmatmul.mubr.msk.bf16.gmra.mrb[28].mxu1 %vm626_vm2, %v4435_v42 }
  0x57   : > { %1123 = vmatprep.mubr.bf16.mxu1 %v4711_v40  ;;  %1104 = vmatpush1.bf16.msra.mxu1 %v4460_v27 }
  0x58   : > { %1105 = vmatprep.subr.bf16.mxu1 %v4465_v30 }
  0x5b   : > { %1106 = vmatpush1.bf16.msra.mxu1 %v4463_v31 }
  0xf1   : > { %v4966_v21 = vpop.f32.mrb[0].mxu1 }
  0xf2   : > { %v4968_v22 = vpop.f32.mrb[1].mxu1 }
  0xf3   : > { %v4970_v23 = vpop.f32.mrb[2].mxu1 }
  0xf4   : > { %v4972_v24 = vpop.f32.mrb[3].mxu1 }
  0xf9   : > { %v702_v25 = vpop.f32.mrb[4].mxu1 }
  0xfa   : > { %v4980_v28 = vpop.f32.mrb[5].mxu1 }
  0xfb   : > { %v706_v29 = vpop.f32.mrb[6].mxu1 }
  0xfc   : > { %v4988_v32 = vpop.f32.mrb[7].mxu1 }
 0x101   : > { %v712_v33 = vpop.f32.mrb[8].mxu1 }
 0x102   : > { %v4990_v34 = vpop.f32.mrb[9].mxu1 }
 0x103   : > { %v4242_v61 = vpop.f32.mrb[0].mxu0  ;;  %v4992_v35 = vpop.f32.mrb[10].mxu1 }
 0x104   : > { %v551_v63 = vpop.f32.mrb[1].mxu0  ;;  %v560_v1 = vadd.f32 %v4242_v61, %v3531_v62  ;;  %v4994_v36 = vpop.f32.mrb[11].mxu1 }
 0x105   : > { %v4243_v0 = vpop.f32.mrb[2].mxu0  ;;  %v552_v4 = vadd.f32 %v3531_v62, %v551_v63  ;;  %v4474_v63 = vld [vmem:[%s5657_s8 + $0x60] sm:$0xff]  }
 0x106   : > { %v563_v2 = vadd.f32 %v4243_v0, %v3531_v62  ;;  %v554_v3 = vpop.f32.mrb[3].mxu0 }
 0x107   : > { %v555_v5 = vadd.f32 %v3531_v62, %v554_v3 }
 0x108   : > { %v878_v6 = vpack.c.bf16 %v563_v2, %v560_v1  ;;  %v4475_v2 = vld [vmem:[%s5657_s8 + $0x20] sm:$0xff]  }
 0x109   : > { %v877_v7 = vpack.c.bf16 %v555_v5, %v552_v4  ;;  %v722_v37 = vpop.f32.mrb[12].mxu1  ;;  %v4476_v4 = vld [vmem:[%s5657_s8 + $0x68] sm:$0xff]  }
 0x10a   : > { %v4996_v38 = vpop.f32.mrb[13].mxu1 }
 0x10b   : > { %v4246_v8 = vpop.f32.mrb[4].mxu0  ;;  %4258 = vmatprep.subr.bf16.mxu0 %v877_v7  ;;  %v726_v39 = vpop.f32.mrb[14].mxu1 }
 0x10c   : > { %v567_v9 = vpop.f32.mrb[5].mxu0  ;;  %4259 = vmatpush3.bf16.msra.mxu0 %v877_v7  ;;  %v576_v11 = vadd.f32 %v4246_v8, %v3531_v62  ;;  %v4998_v41 = vpop.f32.mrb[15].mxu1 }
 0x10d   : > { %v4247_v10 = vpop.f32.mrb[6].mxu0  ;;  %4260 = vmatprep.subr.bf16.mxu0 %v878_v6  ;;  %v568_v14 = vadd.f32 %v3531_v62, %v567_v9 }
 0x10e   : > { %v579_v12 = vadd.f32 %v4247_v10, %v3531_v62  ;;  %v570_v13 = vpop.f32.mrb[7].mxu0 }
 0x10f   : > { %v571_v15 = vadd.f32 %v3531_v62, %v570_v13  ;;  %v4473_v62 = vld [vmem:[%s5657_s8 + $0x18] sm:$0xff]  }
 0x110   : > { %v880_v16 = vpack.c.bf16 %v579_v12, %v576_v11  ;;  %4261 = vmatpush3.bf16.msra.mxu0 %v878_v6 }
 0x111   : > { %v879_v17 = vpack.c.bf16 %v571_v15, %v568_v14  ;;  %v5000_v42 = vpop.f32.mrb[16].mxu1 }
 0x112   : > { %v5011_v47 = vpop.f32.mrb[17].mxu1 }
 0x113   : > { %4262 = vmatprep.subr.bf16.mxu0 %v879_v17  ;;  %v5013_v48 = vpop.f32.mrb[18].mxu1 }
 0x114   : > { %4263 = vmatpush3.bf16.msra.mxu0 %v879_v17  ;;  %v5015_v49 = vpop.f32.mrb[19].mxu1 }
 0x115   : > { %4264 = vmatprep.subr.bf16.mxu0 %v880_v16 }
 0x118   : > { %4265 = vmatpush3.bf16.msra.mxu0 %v880_v16 }
 0x119   : > { %3983 = vmatprep.subr.bf16.mxu0 %v4466_v44  ;;  %v5020_v51 = vpop.f32.mrb[20].mxu1 }
 0x11a   : > { %v5025_v53 = vpop.f32.mrb[21].mxu1 }
 0x11b   : > { %4267 = vmatmul.mubr.msk.bf16.vlgmr.msra.gmra.mrb[16].mxu0 %vm901_vm3, %v4952_v18  ;;  %v5027_v54 = vpop.f32.mrb[22].mxu1 }
 0x11c   : > { %4270 = vmatprep.mubr.msk.bf16.mxu0 %vm901_vm3, %v4955_v19  ;;  %3984 = vmatpush3.bf16.msra.mxu0 %v4467_v45  ;;  %v5029_v55 = vpop.f32.mrb[23].mxu1 }
 0x11d   : > { %3985 = vmatprep.subr.bf16.mxu0 %v4468_v46 }
 0x120   : > { %3986 = vmatpush3.bf16.msra.mxu0 %v4469_v50 }
 0x121   : > { %v5034_v57 = vpop.f32.mrb[24].mxu1  ;;  %3987 = vmatprep.subr.bf16.mxu0 %v4470_v52  ;;  %v999_v52 = vld [vmem:[%s5656_s7] sm:$0x3] }
 0x122   : > { %v5039_v59 = vpop.f32.mrb[25].mxu1 }
 0x123   : > { %4271 = vmatmul.mubr.msk.bf16.gmra.mrb[20].mxu0 %vm901_vm3, %v4962_v20  ;;  %v5041_v60 = vpop.f32.mrb[26].mxu1 }
 0x124   : > { %v5043_v61 = vpop.f32.mrb[27].mxu1  ;;  %3988 = vmatpush3.bf16.msra.mxu0 %v4471_v56 }
 0x125   : > { %3989 = vmatprep.subr.bf16.mxu0 %v4472_v58 }
 0x128   : > { %3990 = vmatpush3.bf16.msra.mxu0 %v4473_v62 }
 0x129   : > { %v5051_v0 = vpop.f32.mrb[28].mxu1  ;;  %3991 = vmatprep.subr.bf16.mxu0 %v4474_v63 }
 0x12a   : > { %v5053_v1 = vpop.f32.mrb[29].mxu1 }
 0x12b   : > { %v5058_v3 = vpop.f32.mrb[30].mxu1 }
 0x12c   : > { %v5063_v5 = vpop.f32.mrb[31].mxu1  ;;  %3992 = vmatpush3.bf16.msra.mxu0 %v4475_v2 }
 0x12d   : > { %3993 = vmatprep.subr.bf16.mxu0 %v4476_v4 }
 0x1ee   : > { %v4268_v6 = vpop.f32.mrb[16].mxu0 }
 0x1ef   : > { %v957_v7 = vadd.f32 %v4268_v6, %v702_v25  ;;  %v948_v8 = vpop.f32.mrb[17].mxu0 }
 0x1f0   : > { %v949_v9 = vadd.f32 %v948_v8, %v4966_v21  ;;  %v4269_v10 = vpop.f32.mrb[18].mxu0 }
 0x1f1   : > { %v960_v11 = vadd.f32 %v4269_v10, %v706_v29  ;;  %v951_v12 = vpop.f32.mrb[19].mxu0  ;;  %v4478_v29 = vld [vmem:[%s5657_s8 + $0x70] sm:$0xff]  }
 0x1f2   : > { %v952_v13 = vadd.f32 %v951_v12, %v4970_v23  ;;  %v4477_v23 = vld [vmem:[%s5657_s8 + $0x28] sm:$0xff]  }
 0x1f3   : > { %v980_v14 = vpack.c.bf16 %v960_v11, %v957_v7  ;;  %3994 = vmatpush3.bf16.msra.mxu0 %v4477_v23 }
 0x1f4   : > { %v979_v15 = vpack.c.bf16 %v952_v13, %v949_v9  ;;  %3995 = vmatprep.subr.bf16.mxu0 %v4478_v29 }
 0x1f6   : > { %1124 = vmatmul.mubr.bf16.vlgmr.msra.gmra.mrb[32].mxu1 %v979_v15  ;;  %v4272_v16 = vpop.f32.mrb[20].mxu0 }
 0x1f7   : > { %v973_v17 = vadd.f32 %v4272_v16, %v722_v37  ;;  %v964_v26 = vpop.f32.mrb[21].mxu0  ;;  %1133 = vmatprep.mubr.bf16.mxu1 %v4711_v40  ;;  %v4481_v37 = vld [vmem:[%s5657_s8 + $0x38] sm:$0xff]  }
 0x1f8   : > { %v965_v27 = vadd.f32 %v964_v26, %v712_v33  ;;  %v4273_v30 = vpop.f32.mrb[22].mxu0  ;;  %v4479_v33 = vld [vmem:[%s5657_s8 + $0x30] sm:$0xff]  }
 0x1f9   : > { %v976_v31 = vadd.f32 %v4273_v30, %v726_v39  ;;  %v967_v25 = vpop.f32.mrb[23].mxu0  ;;  %3996 = vmatpush3.bf16.msra.mxu0 %v4479_v33  ;;  %v1001_v39 = vlaneseq }
 0x1fa   : > { %v968_v44 = vadd.f32 %v967_v25, %v4992_v35  ;;  %v4480_v35 = vld [vmem:[%s5657_s8 + $0x78] sm:$0xff]  }
 0x1fb   : > { %v982_v21 = vpack.c.bf16 %v976_v31, %v973_v17  ;;  %3997 = vmatprep.subr.bf16.mxu0 %v4480_v35  ;;  %v1002_v46 = vshrl.u32 %v1001_v39, 7 }
 0x1fc   : > { %v981_v45 = vpack.c.bf16 %v968_v44, %v965_v27 }
 0x1fd   : > { %3998 = vmatpush3.bf16.msra.mxu0 %v4481_v37  ;;  %v5088_v50 = vsub.s32 0, %v1002_v46  ;;  %v5093_v56 = vsub.s32 1, %v1002_v46 }
 0x1fe   : > { %1134 = vmatmul.mubr.bf16.gmra.mrb[36].mxu1 %v980_v14 }
 0x1ff   : > { %1143 = vmatprep.mubr.bf16.mxu1 %v4711_v40  ;;  %v1004_v58 = vrot.slane %v999_v52, %v5088_v50  ;;  %v1008_v62 = vrot.slane %v999_v52, %v5093_v56 }
 0x206   : > { %1144 = vmatmul.mubr.bf16.gmra.mrb[40].mxu1 %v981_v45 }
 0x207   : > { %1153 = vmatprep.mubr.bf16.mxu1 %v4711_v40 }
 0x20e   : > { %1154 = vmatmul.mubr.bf16.gmra.mrb[44].mxu1 %v982_v21 }
 0x20f   : > { %4282 = vmatprep.mubr.msk.bf16.mxu1 %vm901_vm3, %v4891_v43 }
 0x2c9   : > { %v1125_v63 = vpop.f32.mrb[32].mxu1 }
 0x2ca   : > { %v1126_v2 = vadd.f32 %v1125_v63, %v1004_v58  ;;  %v1127_v4 = vpop.f32.mrb[33].mxu1 }
 0x2cb   : > { %v1128_v6 = vadd.f32 %v1127_v4, %v1008_v62  ;;  %v1129_v7 = vpop.f32.mrb[34].mxu1 }
 0x2cc   : > { %v1130_v8 = vadd.f32 %v1129_v7, %v1004_v58  ;;  %v1131_v9 = vpop.f32.mrb[35].mxu1  ;;  %v1164_v11 = vmax.f32 %v1126_v2, 0.0 }
 0x2cd   : > { %v1132_v10 = vadd.f32 %v1131_v9, %v1008_v62  ;;  %v1165_v13 = vmax.f32 %v1128_v6, 0.0 }
 0x2ce   : > { %v1166_v12 = vmax.f32 %v1130_v8, 0.0 }
 0x2cf   : > { %v1167_v14 = vmax.f32 %v1132_v10, 0.0 }
 0x2d0   : > { %v1180_v15 = vpack.c.bf16 %v1166_v12, %v1164_v11 }
 0x2d1   : > { %v1181_v16 = vpack.c.bf16 %v1167_v14, %v1165_v13  ;;  %v1135_v17 = vpop.f32.mrb[36].mxu1 }
 0x2d2   : > { %v1136_v26 = vadd.f32 %v1135_v17, %v1004_v58  ;;  %v1137_v27 = vpop.f32.mrb[37].mxu1 }
 0x2d3   : > { %v1138_v30 = vadd.f32 %v1137_v27, %v1008_v62  ;;  %v1139_v31 = vpop.f32.mrb[38].mxu1  ;;  %1355 = vmatprep.mubr.bf16.mxu0 %v1181_v16 }
 0x2d4   : > { %v1140_v25 = vadd.f32 %v1139_v31, %v1004_v58  ;;  %v1141_v44 = vpop.f32.mrb[39].mxu1  ;;  %1356 = vmatmul.mubr.bf16.vlgmr.msra.gmra.mrb[24].mxu0 %v1180_v15  ;;  %v1168_v45 = vmax.f32 %v1136_v26, 0.0 }
 0x2d5   : > { %v1142_v21 = vadd.f32 %v1141_v44, %v1008_v62  ;;  %v1169_v29 = vmax.f32 %v1138_v30, 0.0 }
 0x2d6   : > { %v1170_v23 = vmax.f32 %v1140_v25, 0.0 }
 0x2d7   : > { %v1171_v33 = vmax.f32 %v1142_v21, 0.0 }
 0x2d8   : > { %v1182_v35 = vpack.c.bf16 %v1170_v23, %v1168_v45 }
 0x2d9   : > { %v1183_v37 = vpack.c.bf16 %v1171_v33, %v1169_v29  ;;  %v1145_v39 = vpop.f32.mrb[40].mxu1  ;;  %v4482_v33 = vld [vmem:[%s5655_s6 + $0x80] ss:$8 sps:$4 sm:$0xff]  }
 0x2da   : > { %v1146_v46 = vadd.f32 %v1145_v39, %v1004_v58  ;;  %v1147_v52 = vpop.f32.mrb[41].mxu1  ;;  %v4488_v39 = vld [vmem:[%s5655_s6 + $0xa0] ss:$8 sps:$4 sm:$0xff]  }
 0x2db   : > { %v1148_v63 = vadd.f32 %v1147_v52, %v1008_v62  ;;  %v1149_v2 = vpop.f32.mrb[42].mxu1  ;;  %1363 = vmatprep.mubr.bf16.mxu0 %v1183_v37  ;;  %v4490_v37 = vld [vmem:[%s5655_s6 + $0xa4] ss:$8 sps:$4 sm:$0xff]   ;;  %v4491_v52 = vld [vmem:[%s5655_s6 + $0xb0] ss:$8 sps:$4 sm:$0xff]  }
 0x2dc   : > { %v1150_v4 = vadd.f32 %v1149_v2, %v1004_v58  ;;  %v1151_v6 = vpop.f32.mrb[43].mxu1  ;;  %1364 = vmatmul.mubr.bf16.gmra.mrb[28].mxu0 %v1182_v35  ;;  %v1172_v8 = vmax.f32 %v1146_v46, 0.0  ;;  %v4485_v35 = vld [vmem:[%s5655_s6 + $0x90] ss:$8 sps:$4 sm:$0xff]   ;;  %v4493_v46 = vld [vmem:[%s5655_s6 + $0xb4] ss:$8 sps:$4 sm:$0xff]  }
 0x2dd   : > { %v1152_v7 = vadd.f32 %v1151_v6, %v1008_v62  ;;  %v1173_v10 = vmax.f32 %v1148_v63, 0.0  ;;  %v4496_v63 = vld [vmem:[%s5655_s6 + $0xc4] ss:$8 sps:$4 sm:$0xff]   ;;  %v4494_v2 = vld [vmem:[%s5655_s6 + $0xc0] ss:$8 sps:$4 sm:$0xff]  }
 0x2de   : > { %v1174_v9 = vmax.f32 %v1150_v4, 0.0  ;;  %v4499_v4 = vld [vmem:[%s5655_s6 + $0xd4] ss:$8 sps:$4 sm:$0xff]   ;;  %v4497_v6 = vld [vmem:[%s5655_s6 + $0xd0] ss:$8 sps:$4 sm:$0xff]  }
 0x2df   : > { %v1175_v11 = vmax.f32 %v1152_v7, 0.0 }
 0x2e0   : > { %v1184_v12 = vpack.c.bf16 %v1174_v9, %v1172_v8  ;;  %v3585_v8 = vld [vmem:[%s5658_s9] ss:$0 sm:$0xff] }
 0x2e1   : > { %v1185_v13 = vpack.c.bf16 %v1175_v11, %v1173_v10  ;;  %v1155_v14 = vpop.f32.mrb[44].mxu1 }
 0x2e2   : > { %v1156_v15 = vadd.f32 %v1155_v14, %v1004_v58  ;;  %v1157_v16 = vpop.f32.mrb[45].mxu1 }
 0x2e3   : > { %v1158_v17 = vadd.f32 %v1157_v16, %v1008_v62  ;;  %v1159_v26 = vpop.f32.mrb[46].mxu1  ;;  %1371 = vmatprep.mubr.bf16.mxu0 %v1185_v13 }
 0x2e4   : > { %v1160_v27 = vadd.f32 %v1159_v26, %v1004_v58  ;;  %v1161_v30 = vpop.f32.mrb[47].mxu1  ;;  %1372 = vmatmul.mubr.bf16.gmra.mrb[32].mxu0 %v1184_v12  ;;  %v1176_v25 = vmax.f32 %v1156_v15, 0.0  ;;  %v4484_v58 = vld [vmem:[%s5655_s6 + $0x84] ss:$8 sps:$4 sm:$0xff]  }
 0x2e5   : > { %v1162_v31 = vadd.f32 %v1161_v30, %v1008_v62  ;;  %v1177_v21 = vmax.f32 %v1158_v17, 0.0  ;;  %v4487_v62 = vld [vmem:[%s5655_s6 + $0x94] ss:$8 sps:$4 sm:$0xff]   ;;  %1579 = vmatprep.subr.bf16.mxu0 %v4484_v58 }
 0x2e6   : > { %v1178_v44 = vmax.f32 %v1160_v27, 0.0  ;;  %1580 = vmatpush1.bf16.msra.mxu0 %v4482_v33 }
 0x2e7   : > { %v1179_v45 = vmax.f32 %v1162_v31, 0.0  ;;  %1581 = vmatprep.subr.bf16.mxu0 %v4487_v62 }
 0x2e8   : > { %v1186_v23 = vpack.c.bf16 %v1178_v44, %v1176_v25 }
 0x2e9   : > { %v1187_v29 = vpack.c.bf16 %v1179_v45, %v1177_v21 }
 0x2ea   : > { %1582 = vmatpush1.bf16.msra.mxu0 %v4485_v35 }
 0x2eb   : > { %1379 = vmatprep.mubr.bf16.mxu0 %v1187_v29  ;;  %1583 = vmatprep.subr.bf16.mxu0 %v4490_v37 }
 0x2ec   : > { %1380 = vmatmul.mubr.bf16.gmra.mrb[36].mxu0 %v1186_v23 }
 0x2ed   : > { %1611 = vmatprep.mubr.bf16.mxu0 %v4711_v40 }
 0x2ee   : > { %1584 = vmatpush1.bf16.msra.mxu0 %v4488_v39 }
 0x2ef   : > { %1585 = vmatprep.subr.bf16.mxu0 %v4493_v46 }
 0x2f2   : > { %1586 = vmatpush1.bf16.msra.mxu0 %v4491_v52 }
 0x2f3   : > { %1587 = vmatprep.subr.bf16.mxu0 %v4496_v63 }
 0x2f6   : > { %1588 = vmatpush1.bf16.msra.mxu0 %v4494_v2 }
 0x2f7   : > { %1589 = vmatprep.subr.bf16.mxu0 %v4499_v4 }
 0x2fa   : > { %1590 = vmatpush1.bf16.msra.mxu0 %v4497_v6 }
 0x3a7   : > { %v3999_v7 = vpop.f32.mrb[24].mxu0 }
 0x3a8   : > { %v4000_v9 = vpop.f32.mrb[25].mxu0 }
 0x3a9   : > { %v4001_v10 = vadd.f32 %v4000_v9, %v3999_v7  ;;  %v4002_v11 = vpop.f32.mrb[26].mxu0 }
 0x3aa   : > { %v4003_v12 = vpop.f32.mrb[27].mxu0 }
 0x3ab   : > { %v1358_v13 = vadd.f32 %v4001_v10, %v3585_v8  ;;  %v4004_v14 = vadd.f32 %v4003_v12, %v4002_v11 }
 0x3ad   : > { %v1361_v15 = vadd.f32 %v4004_v14, %v3585_v8  ;;  %v1388_v16 = vmax.f32 %v1358_v13, 0.0 }
 0x3af   : > { %v1389_v17 = vmax.f32 %v1361_v15, 0.0  ;;  %v4005_v26 = vpop.f32.mrb[28].mxu0 }
 0x3b0   : > { %v4006_v27 = vpop.f32.mrb[29].mxu0 }
 0x3b1   : > { %v4007_v30 = vadd.f32 %v4006_v27, %v4005_v26  ;;  %v4008_v31 = vpop.f32.mrb[30].mxu0  ;;  %v1396_v25 = vpack.c.bf16 %v1389_v17, %v1388_v16 }
 0x3b2   : > { %v4009_v44 = vpop.f32.mrb[31].mxu0 }
 0x3b3   : > { %v1366_v21 = vadd.f32 %v4007_v30, %v3585_v8  ;;  %v4010_v45 = vadd.f32 %v4009_v44, %v4008_v31  ;;  %4274 = vmatprep.subr.bf16.mxu1 %v1396_v25  ;;  %v4502_v30 = vld [vmem:[%s5655_s6 + $0xe4] ss:$8 sps:$4 sm:$0xff]   ;;  %v4505_v31 = vld [vmem:[%s5655_s6 + $0xf4] ss:$8 sps:$4 sm:$0xff]  }
 0x3b4   : > { %4275 = vmatpush3.bf16.msra.mxu1 %v1396_v25  ;;  %1591 = vmatprep.subr.bf16.mxu0 %v4502_v30  ;;  %v4503_v25 = vld [vmem:[%s5655_s6 + $0xf0] ss:$8 sps:$4 sm:$0xff]   ;;  %v4506_v44 = vld [vmem:[%s5657_s8 + $0xc0] sm:$0xff]  }
 0x3b5   : > { %v1369_v23 = vadd.f32 %v4010_v45, %v3585_v8  ;;  %v1390_v29 = vmax.f32 %v1366_v21, 0.0  ;;  %v4507_v21 = vld [vmem:[%s5657_s8 + $0x80] sm:$0xff]   ;;  %v4508_v45 = vld [vmem:[%s5657_s8 + $0xc8] sm:$0xff]  }
 0x3b7   : > { %v1391_v33 = vmax.f32 %v1369_v23, 0.0  ;;  %v4011_v58 = vpop.f32.mrb[32].mxu0  ;;  %v4509_v23 = vld [vmem:[%s5657_s8 + $0x88] sm:$0xff]  }
 0x3b8   : > { %v4012_v62 = vpop.f32.mrb[33].mxu0 }
 0x3b9   : > { %v4013_v35 = vadd.f32 %v4012_v62, %v4011_v58  ;;  %v4014_v37 = vpop.f32.mrb[34].mxu0  ;;  %v1397_v39 = vpack.c.bf16 %v1391_v33, %v1390_v29  ;;  %v4510_v29 = vld [vmem:[%s5657_s8 + $0xd0] sm:$0xff]   ;;  %v4512_v58 = vld [vmem:[%s5657_s8 + $0xd8] sm:$0xff]  }
 0x3ba   : > { %v4015_v46 = vpop.f32.mrb[35].mxu0  ;;  %v4511_v33 = vld [vmem:[%s5657_s8 + $0x90] sm:$0xff]   ;;  %v4513_v62 = vld [vmem:[%s5657_s8 + $0x98] sm:$0xff]  }
 0x3bb   : > { %v1374_v52 = vadd.f32 %v4013_v35, %v3585_v8  ;;  %v4016_v63 = vadd.f32 %v4015_v46, %v4014_v37  ;;  %4276 = vmatprep.subr.bf16.mxu1 %v1397_v39  ;;  %v4514_v35 = vld [vmem:[%s5657_s8 + $0xe0] sm:$0xff]  }
 0x3bc   : > { %4277 = vmatpush3.bf16.msra.mxu1 %v1397_v39  ;;  %v4515_v37 = vld [vmem:[%s5657_s8 + $0xa0] sm:$0xff]   ;;  %v4516_v39 = vld [vmem:[%s5657_s8 + $0xe8] sm:$0xff]  }
 0x3bd   : > { %v1377_v2 = vadd.f32 %v4016_v63, %v3585_v8  ;;  %v1392_v4 = vmax.f32 %v1374_v52, 0.0 }
 0x3bf   : > { %v1393_v6 = vmax.f32 %v1377_v2, 0.0  ;;  %v4017_v7 = vpop.f32.mrb[36].mxu0 }
 0x3c0   : > { %v4018_v9 = vpop.f32.mrb[37].mxu0 }
 0x3c1   : > { %v4019_v10 = vadd.f32 %v4018_v9, %v4017_v7  ;;  %v4020_v11 = vpop.f32.mrb[38].mxu0  ;;  %v1398_v12 = vpack.c.bf16 %v1393_v6, %v1392_v4 }
 0x3c2   : > { %v4021_v13 = vpop.f32.mrb[39].mxu0 }
 0x3c3   : > { %v1382_v14 = vadd.f32 %v4019_v10, %v3585_v8  ;;  %v4022_v15 = vadd.f32 %v4021_v13, %v4020_v11  ;;  %4278 = vmatprep.subr.bf16.mxu1 %v1398_v12 }
 0x3c4   : > { %4279 = vmatpush3.bf16.msra.mxu1 %v1398_v12 }
 0x3c5   : > { %v1385_v16 = vadd.f32 %v4022_v15, %v3585_v8  ;;  %v1394_v17 = vmax.f32 %v1382_v14, 0.0  ;;  %v4500_v8 = vld [vmem:[%s5655_s6 + $0xe0] ss:$8 sps:$4 sm:$0xff]  }
 0x3c6   : > { %1592 = vmatpush1.bf16.msra.mxu0 %v4500_v8 }
 0x3c7   : > { %v1395_v26 = vmax.f32 %v1385_v16, 0.0  ;;  %1593 = vmatprep.subr.bf16.mxu0 %v4505_v31 }
 0x3c9   : > { %v1399_v27 = vpack.c.bf16 %v1395_v26, %v1394_v17 }
 0x3ca   : > { %1594 = vmatpush1.bf16.msra.mxu0 %v4503_v25 }
 0x3cb   : > { %4280 = vmatprep.subr.bf16.mxu1 %v1399_v27 }
 0x3cc   : > { %4281 = vmatpush3.bf16.msra.mxu1 %v1399_v27 }
 0x3cd   : > { %4031 = vmatprep.subr.bf16.mxu1 %v4506_v44 }
 0x3cf   : > { %4283 = vmatmul.mubr.msk.bf16.vlgmr.msra.gmra.mrb[48].mxu1 %vm901_vm3, %v4952_v18 }
 0x3d0   : > { %4286 = vmatprep.mubr.msk.bf16.mxu1 %vm901_vm3, %v4955_v19  ;;  %4032 = vmatpush3.bf16.msra.mxu1 %v4507_v21 }
 0x3d1   : > { %4033 = vmatprep.subr.bf16.mxu1 %v4508_v45 }
 0x3d4   : > { %4034 = vmatpush3.bf16.msra.mxu1 %v4509_v23 }
 0x3d5   : > { %4035 = vmatprep.subr.bf16.mxu1 %v4510_v29 }
 0x3d7   : > { %4287 = vmatmul.mubr.msk.bf16.gmra.mrb[52].mxu1 %vm901_vm3, %v4962_v20 }
 0x3d8   : > { %4036 = vmatpush3.bf16.msra.mxu1 %v4511_v33 }
 0x3d9   : > { %4037 = vmatprep.subr.bf16.mxu1 %v4512_v58 }
 0x3dc   : > { %4038 = vmatpush3.bf16.msra.mxu1 %v4513_v62 }
 0x3dd   : > { %4039 = vmatprep.subr.bf16.mxu1 %v4514_v35 }
 0x3e0   : > { %4040 = vmatpush3.bf16.msra.mxu1 %v4515_v37 }
 0x3e1   : > { %4041 = vmatprep.subr.bf16.mxu1 %v4516_v39 }
 0x4a2   : > { %v4284_v46 = vpop.f32.mrb[48].mxu1 }
 0x4a3   : > { %v1443_v52 = vadd.f32 %v4284_v46, %v4980_v28  ;;  %v1434_v63 = vpop.f32.mrb[49].mxu1 }
 0x4a4   : > { %v1435_v2 = vadd.f32 %v1434_v63, %v4968_v22  ;;  %v4285_v4 = vpop.f32.mrb[50].mxu1 }
 0x4a5   : > { %v1446_v6 = vadd.f32 %v4285_v4, %v4988_v32  ;;  %v1437_v7 = vpop.f32.mrb[51].mxu1 }
 0x4a6   : > { %v1438_v9 = vadd.f32 %v1437_v7, %v4972_v24  ;;  %v4517_v24 = vld [vmem:[%s5657_s8 + $0xa8] sm:$0xff]  }
 0x4a7   : > { %v1466_v10 = vpack.c.bf16 %v1446_v6, %v1443_v52  ;;  %4042 = vmatpush3.bf16.msra.mxu1 %v4517_v24 }
 0x4a8   : > { %v1465_v11 = vpack.c.bf16 %v1438_v9, %v1435_v2 }
 0x4aa   : > { %v4288_v12 = vpop.f32.mrb[52].mxu1  ;;  %1612 = vmatmul.mubr.bf16.vlgmr.msra.gmra.mrb[40].mxu0 %v1465_v11 }
 0x4ab   : > { %v1459_v13 = vadd.f32 %v4288_v12, %v4996_v38  ;;  %v1450_v14 = vpop.f32.mrb[53].mxu1  ;;  %1621 = vmatprep.mubr.bf16.mxu0 %v4711_v40  ;;  %v4520_v38 = vld [vmem:[%s5657_s8 + $0xf8] sm:$0xff]  }
 0x4ac   : > { %v1451_v28 = vadd.f32 %v1450_v14, %v4990_v34  ;;  %v4289_v15 = vpop.f32.mrb[54].mxu1  ;;  %v4518_v34 = vld [vmem:[%s5657_s8 + $0xf0] sm:$0xff]  }
 0x4ad   : > { %v1462_v22 = vadd.f32 %v4289_v15, %v4998_v41  ;;  %v1453_v16 = vpop.f32.mrb[55].mxu1  ;;  %4043 = vmatprep.subr.bf16.mxu1 %v4518_v34  ;;  %v3622_v41 = vld [vmem:[%s5656_s7 + $0x2] sm:$0x3] }
 0x4ae   : > { %v1454_v32 = vadd.f32 %v1453_v16, %v4994_v36  ;;  %v4519_v36 = vld [vmem:[%s5657_s8 + $0xb0] sm:$0xff]   ;;  %v1492_v27 = vrot.slane %v3622_v41, %v5088_v50  ;;  %v1496_v30 = vrot.slane %v3622_v41, %v5093_v56 }
 0x4af   : > { %v1468_v17 = vpack.c.bf16 %v1462_v22, %v1459_v13  ;;  %4044 = vmatpush3.bf16.msra.mxu1 %v4519_v36 }
 0x4b0   : > { %v1467_v26 = vpack.c.bf16 %v1454_v32, %v1451_v28  ;;  %4045 = vmatprep.subr.bf16.mxu1 %v4520_v38 }
 0x4b2   : > { %1622 = vmatmul.mubr.bf16.gmra.mrb[44].mxu0 %v1466_v10 }
 0x4b3   : > { %1631 = vmatprep.mubr.bf16.mxu0 %v4711_v40 }
 0x4ba   : > { %1632 = vmatmul.mubr.bf16.gmra.mrb[48].mxu0 %v1467_v26 }
 0x4bb   : > { %1641 = vmatprep.mubr.bf16.mxu0 %v4711_v40 }
 0x4c2   : > { %1642 = vmatmul.mubr.bf16.gmra.mrb[52].mxu0 %v1468_v17 }
 0x4c3   : > { %4298 = vmatprep.mubr.msk.bf16.mxu0 %vm901_vm3, %v4891_v43  ;;  %v4521_v43 = vld [vmem:[%s5657_s8 + $0xb8] sm:$0xff]  }
 0x4c4   : > { %4046 = vmatpush3.bf16.msra.mxu1 %v4521_v43 }
 0x57d   : > { %v1613_v8 = vpop.f32.mrb[40].mxu0 }
 0x57e   : > { %v1614_v31 = vadd.f32 %v1613_v8, %v1492_v27  ;;  %v1615_v25 = vpop.f32.mrb[41].mxu0 }
 0x57f   : > { %v1616_v44 = vadd.f32 %v1615_v25, %v1496_v30  ;;  %v1617_v21 = vpop.f32.mrb[42].mxu0 }
 0x580   : > { %v1618_v45 = vadd.f32 %v1617_v21, %v1492_v27  ;;  %v1619_v23 = vpop.f32.mrb[43].mxu0  ;;  %v1652_v33 = vmax.f32 %v1614_v31, 0.0 }
 0x581   : > { %v1620_v29 = vadd.f32 %v1619_v23, %v1496_v30  ;;  %v1653_v62 = vmax.f32 %v1616_v44, 0.0 }
 0x582   : > { %v1654_v58 = vmax.f32 %v1618_v45, 0.0 }
 0x583   : > { %v1655_v35 = vmax.f32 %v1620_v29, 0.0 }
 0x584   : > { %v1668_v37 = vpack.c.bf16 %v1654_v58, %v1652_v33 }
 0x585   : > { %v1669_v39 = vpack.c.bf16 %v1655_v35, %v1653_v62  ;;  %v1623_v46 = vpop.f32.mrb[44].mxu0 }
 0x586   : > { %v1624_v52 = vadd.f32 %v1623_v46, %v1492_v27  ;;  %v1625_v63 = vpop.f32.mrb[45].mxu0 }
 0x587   : > { %v1626_v2 = vadd.f32 %v1625_v63, %v1496_v30  ;;  %v1627_v4 = vpop.f32.mrb[46].mxu0  ;;  %1845 = vmatprep.mubr.bf16.mxu1 %v1669_v39  ;;  %v4522_v63 = vld [vmem:[%s5655_s6 + $0x100] ss:$8 sps:$4 sm:$0xff]  }
 0x588   : > { %v1628_v6 = vadd.f32 %v1627_v4, %v1492_v27  ;;  %v1629_v7 = vpop.f32.mrb[47].mxu0  ;;  %1846 = vmatmul.mubr.bf16.vlgmr.msra.gmra.mrb[56].mxu1 %v1668_v37  ;;  %v1656_v10 = vmax.f32 %v1624_v52, 0.0  ;;  %v4530_v4 = vld [vmem:[%s5655_s6 + $0x124] ss:$8 sps:$4 sm:$0xff]  }
 0x589   : > { %v1630_v9 = vadd.f32 %v1629_v7, %v1496_v30  ;;  %v1657_v12 = vmax.f32 %v1626_v2, 0.0  ;;  %v4525_v2 = vld [vmem:[%s5655_s6 + $0x110] ss:$8 sps:$4 sm:$0xff]   ;;  %v4533_v7 = vld [vmem:[%s5655_s6 + $0x134] ss:$8 sps:$4 sm:$0xff]  }
 0x58a   : > { %v1658_v11 = vmax.f32 %v1628_v6, 0.0  ;;  %v4528_v6 = vld [vmem:[%s5655_s6 + $0x120] ss:$8 sps:$4 sm:$0xff]  }
 0x58b   : > { %v1659_v13 = vmax.f32 %v1630_v9, 0.0  ;;  %v4531_v9 = vld [vmem:[%s5655_s6 + $0x130] ss:$8 sps:$4 sm:$0xff]  }
 0x58c   : > { %v1670_v14 = vpack.c.bf16 %v1658_v11, %v1656_v10  ;;  %v4536_v10 = vld [vmem:[%s5655_s6 + $0x144] ss:$8 sps:$4 sm:$0xff]   ;;  %v4534_v11 = vld [vmem:[%s5655_s6 + $0x140] ss:$8 sps:$4 sm:$0xff]  }
 0x58d   : > { %v1671_v28 = vpack.c.bf16 %v1659_v13, %v1657_v12  ;;  %v1633_v15 = vpop.f32.mrb[48].mxu0  ;;  %v4539_v12 = vld [vmem:[%s5655_s6 + $0x154] ss:$8 sps:$4 sm:$0xff]   ;;  %v4537_v13 = vld [vmem:[%s5655_s6 + $0x150] ss:$8 sps:$4 sm:$0xff]  }
 0x58e   : > { %v1634_v22 = vadd.f32 %v1633_v15, %v1492_v27  ;;  %v1635_v16 = vpop.f32.mrb[49].mxu0 }
 0x58f   : > { %v1636_v32 = vadd.f32 %v1635_v16, %v1496_v30  ;;  %v1637_v17 = vpop.f32.mrb[50].mxu0  ;;  %1853 = vmatprep.mubr.bf16.mxu1 %v1671_v28  ;;  %v3672_v28 = vld [vmem:[%s5658_s9 + $0x1] ss:$0 sm:$0xff] }
 0x590   : > { %v1638_v26 = vadd.f32 %v1637_v17, %v1492_v27  ;;  %v1639_v24 = vpop.f32.mrb[51].mxu0  ;;  %1854 = vmatmul.mubr.bf16.gmra.mrb[60].mxu1 %v1670_v14  ;;  %v1660_v36 = vmax.f32 %v1634_v22, 0.0 }
 0x591   : > { %v1640_v34 = vadd.f32 %v1639_v24, %v1496_v30  ;;  %v1661_v43 = vmax.f32 %v1636_v32, 0.0 }
 0x592   : > { %v1662_v38 = vmax.f32 %v1638_v26, 0.0 }
 0x593   : > { %v1663_v41 = vmax.f32 %v1640_v34, 0.0 }
 0x594   : > { %v1672_v8 = vpack.c.bf16 %v1662_v38, %v1660_v36 }
 0x595   : > { %v1673_v31 = vpack.c.bf16 %v1663_v41, %v1661_v43  ;;  %v1643_v25 = vpop.f32.mrb[52].mxu0 }
 0x596   : > { %v1644_v44 = vadd.f32 %v1643_v25, %v1492_v27  ;;  %v1645_v21 = vpop.f32.mrb[53].mxu0 }
 0x597   : > { %v1646_v45 = vadd.f32 %v1645_v21, %v1496_v30  ;;  %v1647_v23 = vpop.f32.mrb[54].mxu0  ;;  %1861 = vmatprep.mubr.bf16.mxu1 %v1673_v31 }
 0x598   : > { %v1648_v29 = vadd.f32 %v1647_v23, %v1492_v27  ;;  %v1649_v33 = vpop.f32.mrb[55].mxu0  ;;  %1862 = vmatmul.mubr.bf16.gmra.mrb[64].mxu1 %v1672_v8  ;;  %v1664_v62 = vmax.f32 %v1644_v44, 0.0  ;;  %v4524_v27 = vld [vmem:[%s5655_s6 + $0x104] ss:$8 sps:$4 sm:$0xff]  }
 0x599   : > { %v1650_v58 = vadd.f32 %v1649_v33, %v1496_v30  ;;  %v1665_v37 = vmax.f32 %v1646_v45, 0.0  ;;  %v4527_v30 = vld [vmem:[%s5655_s6 + $0x114] ss:$8 sps:$4 sm:$0xff]   ;;  %2069 = vmatprep.subr.bf16.mxu1 %v4524_v27 }
 0x59a   : > { %v1666_v35 = vmax.f32 %v1648_v29, 0.0  ;;  %2070 = vmatpush1.bf16.msra.mxu1 %v4522_v63 }
 0x59b   : > { %v1667_v39 = vmax.f32 %v1650_v58, 0.0  ;;  %2071 = vmatprep.subr.bf16.mxu1 %v4527_v30 }
 0x59c   : > { %v1674_v46 = vpack.c.bf16 %v1666_v35, %v1664_v62 }
 0x59d   : > { %v1675_v52 = vpack.c.bf16 %v1667_v39, %v1665_v37 }
 0x59e   : > { %2072 = vmatpush1.bf16.msra.mxu1 %v4525_v2 }
 0x59f   : > { %1869 = vmatprep.mubr.bf16.mxu1 %v1675_v52  ;;  %2073 = vmatprep.subr.bf16.mxu1 %v4530_v4 }
 0x5a0   : > { %1870 = vmatmul.mubr.bf16.gmra.mrb[68].mxu1 %v1674_v46 }
 0x5a1   : > { %2101 = vmatprep.mubr.bf16.mxu1 %v4711_v40 }
 0x5a2   : > { %2074 = vmatpush1.bf16.msra.mxu1 %v4528_v6 }
 0x5a3   : > { %2075 = vmatprep.subr.bf16.mxu1 %v4533_v7 }
 0x5a6   : > { %2076 = vmatpush1.bf16.msra.mxu1 %v4531_v9 }
 0x5a7   : > { %2077 = vmatprep.subr.bf16.mxu1 %v4536_v10 }
 0x5aa   : > { %2078 = vmatpush1.bf16.msra.mxu1 %v4534_v11 }
 0x5ab   : > { %2079 = vmatprep.subr.bf16.mxu1 %v4539_v12 }
 0x5ae   : > { %2080 = vmatpush1.bf16.msra.mxu1 %v4537_v13 }
 0x65b   : > { %v4047_v14 = vpop.f32.mrb[56].mxu1 }
 0x65c   : > { %v4048_v15 = vpop.f32.mrb[57].mxu1 }
 0x65d   : > { %v4049_v22 = vadd.f32 %v4048_v15, %v4047_v14  ;;  %v4050_v16 = vpop.f32.mrb[58].mxu1 }
 0x65e   : > { %v4051_v32 = vpop.f32.mrb[59].mxu1 }
 0x65f   : > { %v1848_v17 = vadd.f32 %v4049_v22, %v3672_v28  ;;  %v4052_v26 = vadd.f32 %v4051_v32, %v4050_v16  ;;  %v4542_v16 = vld [vmem:[%s5655_s6 + $0x164] ss:$8 sps:$4 sm:$0xff]  }
 0x660   : > { %2081 = vmatprep.subr.bf16.mxu1 %v4542_v16  ;;  %v4547_v32 = vld [vmem:[%s5657_s8 + $0x100] sm:$0xff]  }
 0x661   : > { %v1851_v24 = vadd.f32 %v4052_v26, %v3672_v28  ;;  %v1878_v34 = vmax.f32 %v1848_v17, 0.0  ;;  %v4548_v17 = vld [vmem:[%s5657_s8 + $0x148] sm:$0xff]  }
 0x662   : > { %v4549_v26 = vld [vmem:[%s5657_s8 + $0x108] sm:$0xff]  }
 0x663   : > { %v1879_v36 = vmax.f32 %v1851_v24, 0.0  ;;  %v4053_v38 = vpop.f32.mrb[60].mxu1  ;;  %v4550_v24 = vld [vmem:[%s5657_s8 + $0x150] sm:$0xff]  }
 0x664   : > { %v4054_v43 = vpop.f32.mrb[61].mxu1 }
 0x665   : > { %v4055_v41 = vadd.f32 %v4054_v43, %v4053_v38  ;;  %v4056_v8 = vpop.f32.mrb[62].mxu1  ;;  %v1886_v31 = vpack.c.bf16 %v1879_v36, %v1878_v34  ;;  %v4551_v34 = vld [vmem:[%s5657_s8 + $0x110] sm:$0xff]   ;;  %v4552_v36 = vld [vmem:[%s5657_s8 + $0x158] sm:$0xff]   ;;  %v4554_v43 = vld [vmem:[%s5657_s8 + $0x160] sm:$0xff]  }
 0x666   : > { %v4057_v25 = vpop.f32.mrb[63].mxu1  ;;  %v4553_v38 = vld [vmem:[%s5657_s8 + $0x118] sm:$0xff]  }
 0x667   : > { %v1856_v44 = vadd.f32 %v4055_v41, %v3672_v28  ;;  %v4058_v21 = vadd.f32 %v4057_v25, %v4056_v8  ;;  %4290 = vmatprep.subr.bf16.mxu0 %v1886_v31  ;;  %v4555_v41 = vld [vmem:[%s5657_s8 + $0x120] sm:$0xff]   ;;  %v4556_v8 = vld [vmem:[%s5657_s8 + $0x168] sm:$0xff]  }
 0x668   : > { %4291 = vmatpush3.bf16.msra.mxu0 %v1886_v31 }
 0x669   : > { %v1859_v45 = vadd.f32 %v4058_v21, %v3672_v28  ;;  %v1880_v23 = vmax.f32 %v1856_v44, 0.0 }
 0x66b   : > { %v1881_v29 = vmax.f32 %v1859_v45, 0.0  ;;  %v4059_v33 = vpop.f32.mrb[64].mxu1 }
 0x66c   : > { %v4060_v58 = vpop.f32.mrb[65].mxu1 }
 0x66d   : > { %v4061_v62 = vadd.f32 %v4060_v58, %v4059_v33  ;;  %v4062_v35 = vpop.f32.mrb[66].mxu1  ;;  %v1887_v37 = vpack.c.bf16 %v1881_v29, %v1880_v23 }
 0x66e   : > { %v4063_v39 = vpop.f32.mrb[67].mxu1 }
 0x66f   : > { %v1864_v46 = vadd.f32 %v4061_v62, %v3672_v28  ;;  %v4064_v52 = vadd.f32 %v4063_v39, %v4062_v35  ;;  %4292 = vmatprep.subr.bf16.mxu0 %v1887_v37 }
 0x670   : > { %4293 = vmatpush3.bf16.msra.mxu0 %v1887_v37 }
 0x671   : > { %v1867_v63 = vadd.f32 %v4064_v52, %v3672_v28  ;;  %v1882_v27 = vmax.f32 %v1864_v46, 0.0 }
 0x673   : > { %v1883_v30 = vmax.f32 %v1867_v63, 0.0  ;;  %v4065_v2 = vpop.f32.mrb[68].mxu1 }
 0x674   : > { %v4066_v4 = vpop.f32.mrb[69].mxu1 }
 0x675   : > { %v4067_v6 = vadd.f32 %v4066_v4, %v4065_v2  ;;  %v4068_v7 = vpop.f32.mrb[70].mxu1  ;;  %v1888_v9 = vpack.c.bf16 %v1883_v30, %v1882_v27  ;;  %v4560_v27 = vld [vmem:[%s5657_s8 + $0x178] sm:$0xff]   ;;  %v3709_v2 = vld [vmem:[%s5656_s7 + $0x4] sm:$0x3] }
 0x676   : > { %v4069_v10 = vpop.f32.mrb[71].mxu1  ;;  %v4561_v30 = vld [vmem:[%s5657_s8 + $0x138] sm:$0xff]   ;;  %v1982_v4 = vrot.slane %v3709_v2, %v5088_v50 }
 0x677   : > { %v1872_v11 = vadd.f32 %v4067_v6, %v3672_v28  ;;  %v4070_v12 = vadd.f32 %v4069_v10, %v4068_v7  ;;  %4294 = vmatprep.subr.bf16.mxu0 %v1888_v9  ;;  %v1986_v6 = vrot.slane %v3709_v2, %v5093_v56 }
 0x678   : > { %4295 = vmatpush3.bf16.msra.mxu0 %v1888_v9 }
 0x679   : > { %v1875_v13 = vadd.f32 %v4070_v12, %v3672_v28  ;;  %v1884_v14 = vmax.f32 %v1872_v11, 0.0  ;;  %v4540_v28 = vld [vmem:[%s5655_s6 + $0x160] ss:$8 sps:$4 sm:$0xff]  }
 0x67a   : > { %2082 = vmatpush1.bf16.msra.mxu1 %v4540_v28 }
 0x67b   : > { %v1885_v15 = vmax.f32 %v1875_v13, 0.0 }
 0x67d   : > { %v1889_v22 = vpack.c.bf16 %v1885_v15, %v1884_v14 }
 0x67f   : > { %4296 = vmatprep.subr.bf16.mxu0 %v1889_v22 }
 0x680   : > { %4297 = vmatpush3.bf16.msra.mxu0 %v1889_v22 }
 0x683   : > { %4299 = vmatmul.mubr.msk.bf16.vlgmr.msra.gmra.mrb[56].mxu0 %vm901_vm3, %v4952_v18  ;;  %v4545_v18 = vld [vmem:[%s5655_s6 + $0x174] ss:$8 sps:$4 sm:$0xff]  }
 0x684   : > { %4302 = vmatprep.mubr.msk.bf16.mxu0 %vm901_vm3, %v4955_v19  ;;  %v4543_v19 = vld [vmem:[%s5655_s6 + $0x170] ss:$8 sps:$4 sm:$0xff]   ;;  %2083 = vmatprep.subr.bf16.mxu1 %v4545_v18 }
 0x685   : > { %2084 = vmatpush1.bf16.msra.mxu1 %v4543_v19 }
 0x68b   : > { %4303 = vmatmul.mubr.msk.bf16.gmra.mrb[60].mxu0 %vm901_vm3, %v4962_v20  ;;  %v4546_v20 = vld [vmem:[%s5657_s8 + $0x140] sm:$0xff]  }
 0x68c   : > { %4079 = vmatprep.subr.bf16.mxu0 %v4546_v20 }
 0x68d   : > { %4080 = vmatpush3.bf16.msra.mxu0 %v4547_v32 }
 0x68e   : > { %4081 = vmatprep.subr.bf16.mxu0 %v4548_v17 }
 0x691   : > { %4082 = vmatpush3.bf16.msra.mxu0 %v4549_v26 }
 0x692   : > { %4083 = vmatprep.subr.bf16.mxu0 %v4550_v24 }
 0x695   : > { %4084 = vmatpush3.bf16.msra.mxu0 %v4551_v34 }
 0x696   : > { %4085 = vmatprep.subr.bf16.mxu0 %v4552_v36 }
 0x699   : > { %4086 = vmatpush3.bf16.msra.mxu0 %v4553_v38 }
 0x69a   : > { %4087 = vmatprep.subr.bf16.mxu0 %v4554_v43 }
 0x69d   : > { %4088 = vmatpush3.bf16.msra.mxu0 %v4555_v41 }
 0x69e   : > { %4089 = vmatprep.subr.bf16.mxu0 %v4556_v8 }
 0x756   : > { %v4300_v31 = vpop.f32.mrb[56].mxu0 }
 0x757   : > { %v1933_v25 = vadd.f32 %v4300_v31, %v5020_v51  ;;  %v1924_v44 = vpop.f32.mrb[57].mxu0 }
 0x758   : > { %v1925_v21 = vadd.f32 %v1924_v44, %v5000_v42  ;;  %v4301_v45 = vpop.f32.mrb[58].mxu0 }
 0x759   : > { %v1936_v23 = vadd.f32 %v4301_v45, %v5027_v54  ;;  %v1927_v29 = vpop.f32.mrb[59].mxu0 }
 0x75a   : > { %v1928_v33 = vadd.f32 %v1927_v29, %v5013_v48 }
 0x75b   : > { %v1956_v58 = vpack.c.bf16 %v1936_v23, %v1933_v25 }
 0x75c   : > { %v1955_v62 = vpack.c.bf16 %v1928_v33, %v1925_v21 }
 0x75e   : > { %v4304_v35 = vpop.f32.mrb[60].mxu0  ;;  %2102 = vmatmul.mubr.bf16.vlgmr.msra.gmra.mrb[72].mxu1 %v1955_v62 }
 0x75f   : > { %v1949_v37 = vadd.f32 %v4304_v35, %v5051_v0  ;;  %v1940_v39 = vpop.f32.mrb[61].mxu0  ;;  %2111 = vmatprep.mubr.bf16.mxu1 %v4711_v40  ;;  %v5324_v0 = vld [vmem:[%s4859_s15] sm:$0xff]  }
 0x760   : > { %v1941_v51 = vadd.f32 %v1940_v39, %v5034_v57  ;;  %v4305_v46 = vpop.f32.mrb[62].mxu0  ;;  %v4557_v57 = vld [vmem:[%s5657_s8 + $0x128] sm:$0xff]  }
 0x761   : > { %v1952_v42 = vadd.f32 %v4305_v46, %v5058_v3  ;;  %v1943_v52 = vpop.f32.mrb[63].mxu0  ;;  %4090 = vmatpush3.bf16.msra.mxu0 %v4557_v57  ;;  %v4559_v3 = vld [vmem:[%s5657_s8 + $0x130] sm:$0xff]  }
 0x762   : > { %v1944_v54 = vadd.f32 %v1943_v52, %v5041_v60  ;;  %v4558_v60 = vld [vmem:[%s5657_s8 + $0x170] sm:$0xff]  }
 0x763   : > { %v1958_v63 = vpack.c.bf16 %v1952_v42, %v1949_v37  ;;  %4091 = vmatprep.subr.bf16.mxu0 %v4558_v60 }
 0x764   : > { %v1957_v48 = vpack.c.bf16 %v1944_v54, %v1941_v51 }
 0x765   : > { %4092 = vmatpush3.bf16.msra.mxu0 %v4559_v3 }
 0x766   : > { %2112 = vmatmul.mubr.bf16.gmra.mrb[76].mxu1 %v1956_v58  ;;  %4093 = vmatprep.subr.bf16.mxu0 %v4560_v27 }
 0x767   : > { %2121 = vmatprep.mubr.bf16.mxu1 %v4711_v40 }
 0x769   : > { %4094 = vmatpush3.bf16.msra.mxu0 %v4561_v30 }
 0x76e   : > { %2122 = vmatmul.mubr.bf16.gmra.mrb[80].mxu1 %v1957_v48 }
 0x76f   : > { %2131 = vmatprep.mubr.bf16.mxu1 %v4711_v40 }
 0x776   : > { %2132 = vmatmul.mubr.bf16.gmra.mrb[84].mxu1 %v1958_v63 }
 0x777   : > { %4314 = vmatprep.mubr.msk.bf16.mxu1 %vm901_vm3, %v5324_v0 }
 0x831   : > { %v2103_v7 = vpop.f32.mrb[72].mxu1 }
 0x832   : > { %v2104_v9 = vadd.f32 %v2103_v7, %v1982_v4  ;;  %v2105_v10 = vpop.f32.mrb[73].mxu1 }
 0x833   : > { %v2106_v11 = vadd.f32 %v2105_v10, %v1986_v6  ;;  %v2107_v12 = vpop.f32.mrb[74].mxu1 }
 0x834   : > { %v2108_v13 = vadd.f32 %v2107_v12, %v1982_v4  ;;  %v2109_v14 = vpop.f32.mrb[75].mxu1  ;;  %v2142_v22 = vmax.f32 %v2104_v9, 0.0 }
 0x835   : > { %v2110_v15 = vadd.f32 %v2109_v14, %v1986_v6  ;;  %v2143_v28 = vmax.f32 %v2106_v11, 0.0  ;;  %v4562_v14 = vld [vmem:[%s5655_s6 + $0x180] ss:$8 sps:$4 sm:$0xff]  }
 0x836   : > { %v2144_v16 = vmax.f32 %v2108_v13, 0.0 }
 0x837   : > { %v2145_v18 = vmax.f32 %v2110_v15, 0.0  ;;  %v4565_v15 = vld [vmem:[%s5655_s6 + $0x190] ss:$8 sps:$4 sm:$0xff]  }
 0x838   : > { %v2158_v19 = vpack.c.bf16 %v2144_v16, %v2142_v22  ;;  %v4570_v22 = vld [vmem:[%s5655_s6 + $0x1a4] ss:$8 sps:$4 sm:$0xff]   ;;  %v4568_v16 = vld [vmem:[%s5655_s6 + $0x1a0] ss:$8 sps:$4 sm:$0xff]  }
 0x839   : > { %v2159_v20 = vpack.c.bf16 %v2145_v18, %v2143_v28  ;;  %v2113_v32 = vpop.f32.mrb[76].mxu1  ;;  %v4573_v28 = vld [vmem:[%s5655_s6 + $0x1b4] ss:$8 sps:$4 sm:$0xff]   ;;  %v4571_v18 = vld [vmem:[%s5655_s6 + $0x1b0] ss:$8 sps:$4 sm:$0xff]  }
 0x83a   : > { %v2114_v17 = vadd.f32 %v2113_v32, %v1982_v4  ;;  %v2115_v26 = vpop.f32.mrb[77].mxu1  ;;  %v4579_v32 = vld [vmem:[%s5655_s6 + $0x1d4] ss:$8 sps:$4 sm:$0xff]  }
 0x83b   : > { %v2116_v24 = vadd.f32 %v2115_v26, %v1986_v6  ;;  %v2117_v34 = vpop.f32.mrb[78].mxu1  ;;  %2335 = vmatprep.mubr.bf16.mxu0 %v2159_v20  ;;  %v4574_v20 = vld [vmem:[%s5655_s6 + $0x1c0] ss:$8 sps:$4 sm:$0xff]  }
 0x83c   : > { %v2118_v36 = vadd.f32 %v2117_v34, %v1982_v4  ;;  %v2119_v38 = vpop.f32.mrb[79].mxu1  ;;  %2336 = vmatmul.mubr.bf16.vlgmr.msra.gmra.mrb[64].mxu0 %v2158_v19  ;;  %v2146_v41 = vmax.f32 %v2114_v17, 0.0  ;;  %v4576_v19 = vld [vmem:[%s5655_s6 + $0x1c4] ss:$8 sps:$4 sm:$0xff]   ;;  %v4577_v17 = vld [vmem:[%s5655_s6 + $0x1d0] ss:$8 sps:$4 sm:$0xff]  }
 0x83d   : > { %v2120_v43 = vadd.f32 %v2119_v38, %v1986_v6  ;;  %v2147_v31 = vmax.f32 %v2116_v24, 0.0  ;;  %v3759_v24 = vld [vmem:[%s5658_s9 + $0x2] ss:$0 sm:$0xff] }
 0x83e   : > { %v2148_v8 = vmax.f32 %v2118_v36, 0.0 }
 0x83f   : > { %v2149_v25 = vmax.f32 %v2120_v43, 0.0 }
 0x840   : > { %v2160_v44 = vpack.c.bf16 %v2148_v8, %v2146_v41 }
 0x841   : > { %v2161_v21 = vpack.c.bf16 %v2149_v25, %v2147_v31  ;;  %v2123_v45 = vpop.f32.mrb[80].mxu1 }
 0x842   : > { %v2124_v23 = vadd.f32 %v2123_v45, %v1982_v4  ;;  %v2125_v29 = vpop.f32.mrb[81].mxu1 }
 0x843   : > { %v2126_v33 = vadd.f32 %v2125_v29, %v1986_v6  ;;  %v2127_v58 = vpop.f32.mrb[82].mxu1  ;;  %2343 = vmatprep.mubr.bf16.mxu0 %v2161_v21 }
 0x844   : > { %v2128_v62 = vadd.f32 %v2127_v58, %v1982_v4  ;;  %v2129_v35 = vpop.f32.mrb[83].mxu1  ;;  %2344 = vmatmul.mubr.bf16.gmra.mrb[68].mxu0 %v2160_v44  ;;  %v2150_v39 = vmax.f32 %v2124_v23, 0.0 }
 0x845   : > { %v2130_v37 = vadd.f32 %v2129_v35, %v1986_v6  ;;  %v2151_v46 = vmax.f32 %v2126_v33, 0.0 }
 0x846   : > { %v2152_v51 = vmax.f32 %v2128_v62, 0.0 }
 0x847   : > { %v2153_v42 = vmax.f32 %v2130_v37, 0.0 }
 0x848   : > { %v2162_v52 = vpack.c.bf16 %v2152_v51, %v2150_v39 }
 0x849   : > { %v2163_v54 = vpack.c.bf16 %v2153_v42, %v2151_v46  ;;  %v2133_v63 = vpop.f32.mrb[84].mxu1 }
 0x84a   : > { %v2134_v48 = vadd.f32 %v2133_v63, %v1982_v4  ;;  %v2135_v57 = vpop.f32.mrb[85].mxu1 }
 0x84b   : > { %v2136_v60 = vadd.f32 %v2135_v57, %v1986_v6  ;;  %v2137_v3 = vpop.f32.mrb[86].mxu1  ;;  %2351 = vmatprep.mubr.bf16.mxu0 %v2163_v54 }
 0x84c   : > { %v2138_v27 = vadd.f32 %v2137_v3, %v1982_v4  ;;  %v2139_v30 = vpop.f32.mrb[87].mxu1  ;;  %2352 = vmatmul.mubr.bf16.gmra.mrb[72].mxu0 %v2162_v52  ;;  %v2154_v7 = vmax.f32 %v2134_v48, 0.0  ;;  %v4564_v4 = vld [vmem:[%s5655_s6 + $0x184] ss:$8 sps:$4 sm:$0xff]  }
 0x84d   : > { %v2140_v2 = vadd.f32 %v2139_v30, %v1986_v6  ;;  %v2155_v10 = vmax.f32 %v2136_v60, 0.0  ;;  %v4567_v6 = vld [vmem:[%s5655_s6 + $0x194] ss:$8 sps:$4 sm:$0xff]   ;;  %2559 = vmatprep.subr.bf16.mxu0 %v4564_v4 }
 0x84e   : > { %v2156_v9 = vmax.f32 %v2138_v27, 0.0  ;;  %2560 = vmatpush1.bf16.msra.mxu0 %v4562_v14 }
 0x84f   : > { %v2157_v11 = vmax.f32 %v2140_v2, 0.0  ;;  %2561 = vmatprep.subr.bf16.mxu0 %v4567_v6 }
 0x850   : > { %v2164_v12 = vpack.c.bf16 %v2156_v9, %v2154_v7 }
 0x851   : > { %v2165_v13 = vpack.c.bf16 %v2157_v11, %v2155_v10 }
 0x852   : > { %2562 = vmatpush1.bf16.msra.mxu0 %v4565_v15 }
 0x853   : > { %2359 = vmatprep.mubr.bf16.mxu0 %v2165_v13  ;;  %2563 = vmatprep.subr.bf16.mxu0 %v4570_v22 }
 0x854   : > { %2360 = vmatmul.mubr.bf16.gmra.mrb[76].mxu0 %v2164_v12 }
 0x855   : > { %2591 = vmatprep.mubr.bf16.mxu0 %v4711_v40 }
 0x856   : > { %2564 = vmatpush1.bf16.msra.mxu0 %v4568_v16  ;;  %v5389_v16 = vld [vmem:[%s4859_s15 + $0x8] sm:$0xff]  }
 0x857   : > { %2565 = vmatprep.subr.bf16.mxu0 %v4573_v28  ;;  %v5394_v28 = vld [vmem:[%s4859_s15 + $0x10] sm:$0xff]  }
 0x85a   : > { %2566 = vmatpush1.bf16.msra.mxu0 %v4571_v18  ;;  %v5399_v18 = vld [vmem:[%s4859_s15 + $0x18] sm:$0xff]   ;;  %s3437_s15 = sshll.u32 %s409_s12, 4  ;;  %s5604_s15 = int_to_ptr.vmem [resolvable:$true] %s3437_s15 }
 0x85b   : > { %2567 = vmatprep.subr.bf16.mxu0 %v4576_v19  ;;  %v4582_v19 = vld [vmem:[%s5655_s6 + $0x1e4] ss:$8 sps:$4 sm:$0xff]   ;;  %s4646_s0 = scalar_lea.vmem %s5604_s15, 64  ;;  %p4653_p0 = scmp.lt.s32.totalorder %s5604_s15, %s4651_s30 }
 0x85c   : > { %p4647_p11 = scmp.ne.s32.totalorder %s5604_s15, %s4646_s0  ;;  %p4654_p1 = scmp.lt.s32.totalorder %s4652_s25, %s4646_s0 }
 0x85e   : > { %2568 = vmatpush1.bf16.msra.mxu0 %v4574_v20  ;;  %v4580_v20 = vld [vmem:[%s5655_s6 + $0x1e0] ss:$8 sps:$4 sm:$0xff]   ;;  %p4648_p12 = pnand %p4647_p11, %p4814_p5  ;;  %p4655_p2 = por %p4654_p1, %p4653_p0 }
 0x85f   : > { %2569 = vmatprep.subr.bf16.mxu0 %v4579_v32  ;;  %v4585_v32 = vld [vmem:[%s5655_s6 + $0x1f4] ss:$8 sps:$4 sm:$0xff]  }
 0x860   : > { %p4649_p13 = pneg %p4648_p12 }
 0x862   : > { %2570 = vmatpush1.bf16.msra.mxu0 %v4577_v17  ;;  %v4583_v17 = vld [vmem:[%s5655_s6 + $0x1f0] ss:$8 sps:$4 sm:$0xff]   ;;  %p4656_p3 = pnand %p4655_p2, %p4649_p13 }
 0x863   : > { %2571 = vmatprep.subr.bf16.mxu0 %v4582_v19 }
 0x866   : > { %2572 = vmatpush1.bf16.msra.mxu0 %v4580_v20 }
 0x867   : > { %2573 = vmatprep.subr.bf16.mxu0 %v4585_v32 }
 0x86a   : > { %2574 = vmatpush1.bf16.msra.mxu0 %v4583_v17 }
 0x90f   : > { %v4095_v26 = vpop.f32.mrb[64].mxu0 }
 0x910   : > { %v4096_v34 = vpop.f32.mrb[65].mxu0 }
 0x911   : > { %v4097_v36 = vadd.f32 %v4096_v34, %v4095_v26  ;;  %v4098_v38 = vpop.f32.mrb[66].mxu0  ;;  %v4586_v26 = vld [vmem:[%s5657_s8 + $0x1c0] sm:$0xff]   ;;  %v4588_v34 = vld [vmem:[%s5657_s8 + $0x1c8] sm:$0xff]  }
 0x912   : > { %v4099_v43 = vpop.f32.mrb[67].mxu0 }
 0x913   : > { %v2338_v41 = vadd.f32 %v4097_v36, %v3759_v24  ;;  %v4100_v8 = vadd.f32 %v4099_v43, %v4098_v38  ;;  %v4589_v36 = vld [vmem:[%s5657_s8 + $0x188] sm:$0xff]   ;;  %v4590_v38 = vld [vmem:[%s5657_s8 + $0x1d0] sm:$0xff]  }
 0x914   : > { %v4591_v43 = vld [vmem:[%s5657_s8 + $0x190] sm:$0xff]  }
 0x915   : > { %v2341_v31 = vadd.f32 %v4100_v8, %v3759_v24  ;;  %v2368_v25 = vmax.f32 %v2338_v41, 0.0  ;;  %v4592_v41 = vld [vmem:[%s5657_s8 + $0x1d8] sm:$0xff]  }
 0x916   : > { %v4593_v8 = vld [vmem:[%s5657_s8 + $0x198] sm:$0xff]  }
 0x917   : > { %v2369_v44 = vmax.f32 %v2341_v31, 0.0  ;;  %v4101_v21 = vpop.f32.mrb[68].mxu0  ;;  %v4594_v31 = vld [vmem:[%s5657_s8 + $0x1e0] sm:$0xff]  }
 0x918   : > { %v4102_v45 = vpop.f32.mrb[69].mxu0 }
 0x919   : > { %v4103_v23 = vadd.f32 %v4102_v45, %v4101_v21  ;;  %v4104_v29 = vpop.f32.mrb[70].mxu0  ;;  %v2376_v33 = vpack.c.bf16 %v2369_v44, %v2368_v25  ;;  %v4595_v25 = vld [vmem:[%s5657_s8 + $0x1a0] sm:$0xff]   ;;  %v4596_v44 = vld [vmem:[%s5657_s8 + $0x1e8] sm:$0xff]  }
 0x91a   : > { %v4105_v58 = vpop.f32.mrb[71].mxu0 }
 0x91b   : > { %v2346_v62 = vadd.f32 %v4103_v23, %v3759_v24  ;;  %v4106_v35 = vadd.f32 %v4105_v58, %v4104_v29  ;;  %4306 = vmatprep.subr.bf16.mxu1 %v2376_v33 }
 0x91c   : > { %4307 = vmatpush3.bf16.msra.mxu1 %v2376_v33 }
 0x91d   : > { %v2349_v37 = vadd.f32 %v4106_v35, %v3759_v24  ;;  %v2370_v39 = vmax.f32 %v2346_v62, 0.0 }
 0x91f   : > { %v2371_v51 = vmax.f32 %v2349_v37, 0.0  ;;  %v4107_v46 = vpop.f32.mrb[72].mxu0 }
 0x920   : > { %v4108_v42 = vpop.f32.mrb[73].mxu0 }
 0x921   : > { %v4109_v52 = vadd.f32 %v4108_v42, %v4107_v46  ;;  %v4110_v54 = vpop.f32.mrb[74].mxu0  ;;  %v2377_v63 = vpack.c.bf16 %v2371_v51, %v2370_v39 }
 0x922   : > { %v4111_v48 = vpop.f32.mrb[75].mxu0 }
 0x923   : > { %v2354_v57 = vadd.f32 %v4109_v52, %v3759_v24  ;;  %v4112_v60 = vadd.f32 %v4111_v48, %v4110_v54  ;;  %4308 = vmatprep.subr.bf16.mxu1 %v2377_v63 }
 0x924   : > { %4309 = vmatpush3.bf16.msra.mxu1 %v2377_v63 }
 0x925   : > { %v2357_v3 = vadd.f32 %v4112_v60, %v3759_v24  ;;  %v2372_v27 = vmax.f32 %v2354_v57, 0.0 }
 0x927   : > { %v2373_v30 = vmax.f32 %v2357_v3, 0.0  ;;  %v4113_v2 = vpop.f32.mrb[76].mxu0 }
 0x928   : > { %v4114_v7 = vpop.f32.mrb[77].mxu0 }
 0x929   : > { %v4115_v9 = vadd.f32 %v4114_v7, %v4113_v2  ;;  %v4116_v10 = vpop.f32.mrb[78].mxu0  ;;  %v2378_v11 = vpack.c.bf16 %v2373_v30, %v2372_v27 }
 0x92a   : > { %v4117_v12 = vpop.f32.mrb[79].mxu0 }
 0x92b   : > { %v2362_v13 = vadd.f32 %v4115_v9, %v3759_v24  ;;  %v4118_v14 = vadd.f32 %v4117_v12, %v4116_v10  ;;  %4310 = vmatprep.subr.bf16.mxu1 %v2378_v11 }
 0x92c   : > { %4311 = vmatpush3.bf16.msra.mxu1 %v2378_v11 }
 0x92d   : > { %v2365_v4 = vadd.f32 %v4118_v14, %v3759_v24  ;;  %v2374_v6 = vmax.f32 %v2362_v13, 0.0  ;;  %v4587_v24 = vld [vmem:[%s5657_s8 + $0x180] sm:$0xff]  }
 0x92f   : > { %v2375_v15 = vmax.f32 %v2365_v4, 0.0 }
 0x931   : > { %v2379_v22 = vpack.c.bf16 %v2375_v15, %v2374_v6 }
 0x933   : > { %4312 = vmatprep.subr.bf16.mxu1 %v2379_v22 }
 0x934   : > { %4313 = vmatpush3.bf16.msra.mxu1 %v2379_v22 }
 0x935   : > { %4127 = vmatprep.subr.bf16.mxu1 %v4586_v26 }
 0x937   : > { %4315 = vmatmul.mubr.msk.bf16.vlgmr.msra.gmra.mrb[88].mxu1 %vm901_vm3, %v5389_v16 }
 0x938   : > { %4318 = vmatprep.mubr.msk.bf16.mxu1 %vm901_vm3, %v5394_v28  ;;  %4128 = vmatpush3.bf16.msra.mxu1 %v4587_v24 }
 0x939   : > { %4129 = vmatprep.subr.bf16.mxu1 %v4588_v34 }
 0x93c   : > { %4130 = vmatpush3.bf16.msra.mxu1 %v4589_v36 }
 0x93d   : > { %4131 = vmatprep.subr.bf16.mxu1 %v4590_v38 }
 0x93f   : > { %4319 = vmatmul.mubr.msk.bf16.gmra.mrb[92].mxu1 %vm901_vm3, %v5399_v18 }
 0x940   : > { %4132 = vmatpush3.bf16.msra.mxu1 %v4591_v43 }
 0x941   : > { %4133 = vmatprep.subr.bf16.mxu1 %v4592_v41 }
 0x944   : > { %4134 = vmatpush3.bf16.msra.mxu1 %v4593_v8 }
 0x945   : > { %4135 = vmatprep.subr.bf16.mxu1 %v4594_v31 }
 0x948   : > { %4136 = vmatpush3.bf16.msra.mxu1 %v4595_v25 }
 0x949   : > { %4137 = vmatprep.subr.bf16.mxu1 %v4596_v44 }
 0xa0a   : > { %v4316_v21 = vpop.f32.mrb[88].mxu1 }
 0xa0b   : > { %v2423_v45 = vadd.f32 %v4316_v21, %v5025_v53  ;;  %v2414_v23 = vpop.f32.mrb[89].mxu1 }
 0xa0c   : > { %v2415_v29 = vadd.f32 %v2414_v23, %v5011_v47  ;;  %v4317_v33 = vpop.f32.mrb[90].mxu1 }
 0xa0d   : > { %v2426_v58 = vadd.f32 %v4317_v33, %v5029_v55  ;;  %v2417_v62 = vpop.f32.mrb[91].mxu1 }
 0xa0e   : > { %v2418_v35 = vadd.f32 %v2417_v62, %v5015_v49  ;;  %v4597_v49 = vld [vmem:[%s5657_s8 + $0x1a8] sm:$0xff]  }
 0xa0f   : > { %v2446_v37 = vpack.c.bf16 %v2426_v58, %v2423_v45  ;;  %4138 = vmatpush3.bf16.msra.mxu1 %v4597_v49 }
 0xa10   : > { %v2445_v39 = vpack.c.bf16 %v2418_v35, %v2415_v29 }
 0xa12   : > { %v4320_v51 = vpop.f32.mrb[92].mxu1  ;;  %2592 = vmatmul.mubr.bf16.vlgmr.msra.gmra.mrb[80].mxu0 %v2445_v39 }
 0xa13   : > { %v2439_v46 = vadd.f32 %v4320_v51, %v5053_v1  ;;  %v2430_v42 = vpop.f32.mrb[93].mxu1  ;;  %2601 = vmatprep.mubr.bf16.mxu0 %v4711_v40  ;;  %v4600_v1 = vld [vmem:[%s5657_s8 + $0x1f8] sm:$0xff]  }
 0xa14   : > { %v2431_v53 = vadd.f32 %v2430_v42, %v5039_v59  ;;  %v4321_v52 = vpop.f32.mrb[94].mxu1  ;;  %v4598_v59 = vld [vmem:[%s5657_s8 + $0x1f0] sm:$0xff]  }
 0xa15   : > { %v2442_v47 = vadd.f32 %v4321_v52, %v5063_v5  ;;  %v2433_v54 = vpop.f32.mrb[95].mxu1  ;;  %4139 = vmatprep.subr.bf16.mxu1 %v4598_v59  ;;  %v4601_v5 = vld [vmem:[%s5657_s8 + $0x1b8] sm:$0xff]  }
 0xa16   : > { %v2434_v55 = vadd.f32 %v2433_v54, %v5043_v61  ;;  %v4599_v61 = vld [vmem:[%s5657_s8 + $0x1b0] sm:$0xff]  }
 0xa17   : > { %v2448_v63 = vpack.c.bf16 %v2442_v47, %v2439_v46  ;;  %4140 = vmatpush3.bf16.msra.mxu1 %v4599_v61 }
 0xa18   : > { %v2447_v48 = vpack.c.bf16 %v2434_v55, %v2431_v53  ;;  %4141 = vmatprep.subr.bf16.mxu1 %v4600_v1 }
 0xa1a   : > { %2602 = vmatmul.mubr.bf16.gmra.mrb[84].mxu0 %v2446_v37 }
 0xa1b   : > { %2611 = vmatprep.mubr.bf16.mxu0 %v4711_v40  ;;  %4142 = vmatpush3.bf16.msra.mxu1 %v4601_v5 }
 0xa22   : > { %2612 = vmatmul.mubr.bf16.gmra.mrb[88].mxu0 %v2447_v48 }
 0xa23   : > { %2621 = vmatprep.mubr.bf16.mxu0 %v4711_v40 }
 0xa2a   : > { %2622 = vmatmul.mubr.bf16.gmra.mrb[92].mxu0 %v2448_v63 }
 0xa2b   : > { %4330 = vmatprep.mubr.msk.bf16.mxu0 %vm901_vm3, %v5324_v0  ;;  %v3796_v0 = vld [vmem:[%s5656_s7 + $0x6] sm:$0x3] }
 0xa2c   : > { %v2472_v57 = vrot.slane %v3796_v0, %v5088_v50  ;;  %v2476_v60 = vrot.slane %v3796_v0, %v5093_v56 }
 0xae5   : > { %v2593_v3 = vpop.f32.mrb[80].mxu0 }
 0xae6   : > { %v2594_v27 = vadd.f32 %v2593_v3, %v2472_v57  ;;  %v2595_v30 = vpop.f32.mrb[81].mxu0  ;;  %v4602_v3 = vld [vmem:[%s5655_s6 + $0x200] ss:$8 sps:$4 sm:$0xff]  }
 0xae7   : > { %v2596_v2 = vadd.f32 %v2595_v30, %v2476_v60  ;;  %v2597_v7 = vpop.f32.mrb[82].mxu0  ;;  %v4610_v30 = vld [vmem:[%s5655_s6 + $0x224] ss:$8 sps:$4 sm:$0xff]  }
 0xae8   : > { %v2598_v9 = vadd.f32 %v2597_v7, %v2472_v57  ;;  %v2599_v10 = vpop.f32.mrb[83].mxu0  ;;  %v2632_v12 = vmax.f32 %v2594_v27, 0.0  ;;  %v4605_v27 = vld [vmem:[%s5655_s6 + $0x210] ss:$8 sps:$4 sm:$0xff]   ;;  %v4613_v7 = vld [vmem:[%s5655_s6 + $0x234] ss:$8 sps:$4 sm:$0xff]  }
 0xae9   : > { %v2600_v11 = vadd.f32 %v2599_v10, %v2476_v60  ;;  %v2633_v14 = vmax.f32 %v2596_v2, 0.0  ;;  %v4608_v2 = vld [vmem:[%s5655_s6 + $0x220] ss:$8 sps:$4 sm:$0xff]   ;;  %v4616_v10 = vld [vmem:[%s5655_s6 + $0x244] ss:$8 sps:$4 sm:$0xff]  }
 0xaea   : > { %v2634_v13 = vmax.f32 %v2598_v9, 0.0  ;;  %v4611_v9 = vld [vmem:[%s5655_s6 + $0x230] ss:$8 sps:$4 sm:$0xff]  }
 0xaeb   : > { %v2635_v4 = vmax.f32 %v2600_v11, 0.0  ;;  %v4614_v11 = vld [vmem:[%s5655_s6 + $0x240] ss:$8 sps:$4 sm:$0xff]  }
 0xaec   : > { %v2648_v6 = vpack.c.bf16 %v2634_v13, %v2632_v12  ;;  %v4619_v12 = vld [vmem:[%s5655_s6 + $0x254] ss:$8 sps:$4 sm:$0xff]   ;;  %v4617_v13 = vld [vmem:[%s5655_s6 + $0x250] ss:$8 sps:$4 sm:$0xff]  }
 0xaed   : > { %v2649_v15 = vpack.c.bf16 %v2635_v4, %v2633_v14  ;;  %v2603_v22 = vpop.f32.mrb[84].mxu0  ;;  %v4622_v14 = vld [vmem:[%s5655_s6 + $0x264] ss:$8 sps:$4 sm:$0xff]   ;;  %v4620_v4 = vld [vmem:[%s5655_s6 + $0x260] ss:$8 sps:$4 sm:$0xff]  }
 0xaee   : > { %v2604_v19 = vadd.f32 %v2603_v22, %v2472_v57  ;;  %v2605_v20 = vpop.f32.mrb[85].mxu0 }
 0xaef   : > { %v2606_v32 = vadd.f32 %v2605_v20, %v2476_v60  ;;  %v2607_v17 = vpop.f32.mrb[86].mxu0  ;;  %2825 = vmatprep.mubr.bf16.mxu1 %v2649_v15  ;;  %v3846_v15 = vld [vmem:[%s5658_s9 + $0x3] ss:$0 sm:$0xff] }
 0xaf0   : > { %v2608_v26 = vadd.f32 %v2607_v17, %v2472_v57  ;;  %v2609_v24 = vpop.f32.mrb[87].mxu0  ;;  %2826 = vmatmul.mubr.bf16.vlgmr.msra.gmra.mrb[96].mxu1 %v2648_v6  ;;  %v2636_v36 = vmax.f32 %v2604_v19, 0.0 }
 0xaf1   : > { %v2610_v34 = vadd.f32 %v2609_v24, %v2476_v60  ;;  %v2637_v43 = vmax.f32 %v2606_v32, 0.0 }
 0xaf2   : > { %v2638_v38 = vmax.f32 %v2608_v26, 0.0 }
 0xaf3   : > { %v2639_v41 = vmax.f32 %v2610_v34, 0.0 }
 0xaf4   : > { %v2650_v8 = vpack.c.bf16 %v2638_v38, %v2636_v36 }
 0xaf5   : > { %v2651_v31 = vpack.c.bf16 %v2639_v41, %v2637_v43  ;;  %v2613_v25 = vpop.f32.mrb[88].mxu0 }
 0xaf6   : > { %v2614_v44 = vadd.f32 %v2613_v25, %v2472_v57  ;;  %v2615_v21 = vpop.f32.mrb[89].mxu0 }
 0xaf7   : > { %v2616_v45 = vadd.f32 %v2615_v21, %v2476_v60  ;;  %v2617_v23 = vpop.f32.mrb[90].mxu0  ;;  %2833 = vmatprep.mubr.bf16.mxu1 %v2651_v31 }
 0xaf8   : > { %v2618_v29 = vadd.f32 %v2617_v23, %v2472_v57  ;;  %v2619_v33 = vpop.f32.mrb[91].mxu0  ;;  %2834 = vmatmul.mubr.bf16.gmra.mrb[100].mxu1 %v2650_v8  ;;  %v2640_v62 = vmax.f32 %v2614_v44, 0.0 }
 0xaf9   : > { %v2620_v58 = vadd.f32 %v2619_v33, %v2476_v60  ;;  %v2641_v37 = vmax.f32 %v2616_v45, 0.0 }
 0xafa   : > { %v2642_v35 = vmax.f32 %v2618_v29, 0.0 }
 0xafb   : > { %v2643_v39 = vmax.f32 %v2620_v58, 0.0 }
 0xafc   : > { %v2652_v51 = vpack.c.bf16 %v2642_v35, %v2640_v62 }
 0xafd   : > { %v2653_v46 = vpack.c.bf16 %v2643_v39, %v2641_v37  ;;  %v2623_v42 = vpop.f32.mrb[92].mxu0 }
 0xafe   : > { %v2624_v53 = vadd.f32 %v2623_v42, %v2472_v57  ;;  %v2625_v52 = vpop.f32.mrb[93].mxu0 }
 0xaff   : > { %v2626_v47 = vadd.f32 %v2625_v52, %v2476_v60  ;;  %v2627_v54 = vpop.f32.mrb[94].mxu0  ;;  %2841 = vmatprep.mubr.bf16.mxu1 %v2653_v46 }
 0xb00   : > { %v2628_v55 = vadd.f32 %v2627_v54, %v2472_v57  ;;  %v2629_v63 = vpop.f32.mrb[95].mxu0  ;;  %2842 = vmatmul.mubr.bf16.gmra.mrb[104].mxu1 %v2652_v51  ;;  %v2644_v49 = vmax.f32 %v2624_v53, 0.0  ;;  %v4604_v57 = vld [vmem:[%s5655_s6 + $0x204] ss:$8 sps:$4 sm:$0xff]  }
 0xb01   : > { %v2630_v48 = vadd.f32 %v2629_v63, %v2476_v60  ;;  %v2645_v61 = vmax.f32 %v2626_v47, 0.0  ;;  %v4607_v60 = vld [vmem:[%s5655_s6 + $0x214] ss:$8 sps:$4 sm:$0xff]   ;;  %3049 = vmatprep.subr.bf16.mxu1 %v4604_v57 }
 0xb02   : > { %v2646_v59 = vmax.f32 %v2628_v55, 0.0  ;;  %3050 = vmatpush1.bf16.msra.mxu1 %v4602_v3  ;;  %v4625_v57 = vld [vmem:[%s5655_s6 + $0x274] ss:$8 sps:$4 sm:$0xff]  }
 0xb03   : > { %v2647_v1 = vmax.f32 %v2630_v48, 0.0  ;;  %3051 = vmatprep.subr.bf16.mxu1 %v4607_v60  ;;  %v4623_v60 = vld [vmem:[%s5655_s6 + $0x270] ss:$8 sps:$4 sm:$0xff]  }
 0xb04   : > { %v2654_v5 = vpack.c.bf16 %v2646_v59, %v2644_v49 }
 0xb05   : > { %v2655_v0 = vpack.c.bf16 %v2647_v1, %v2645_v61 }
 0xb06   : > { %3052 = vmatpush1.bf16.msra.mxu1 %v4605_v27  ;;  %v4629_v27 = vld [vmem:[%s5657_s8 + $0x208] sm:$0xff]  }
 0xb07   : > { %2849 = vmatprep.mubr.bf16.mxu1 %v2655_v0  ;;  %3053 = vmatprep.subr.bf16.mxu1 %v4610_v30  ;;  %v4630_v30 = vld [vmem:[%s5657_s8 + $0x250] sm:$0xff]  }
 0xb08   : > { %2850 = vmatmul.mubr.bf16.gmra.mrb[108].mxu1 %v2654_v5 }
 0xb09   : > { %3081 = vmatprep.mubr.bf16.mxu1 %v4711_v40 }
 0xb0a   : > { %3054 = vmatpush1.bf16.msra.mxu1 %v4608_v2  ;;  %v4631_v2 = vld [vmem:[%s5657_s8 + $0x210] sm:$0xff]  }
 0xb0b   : > { %3055 = vmatprep.subr.bf16.mxu1 %v4613_v7  ;;  %v4632_v7 = vld [vmem:[%s5657_s8 + $0x258] sm:$0xff]  }
 0xb0e   : > { %3056 = vmatpush1.bf16.msra.mxu1 %v4611_v9  ;;  %v4633_v9 = vld [vmem:[%s5657_s8 + $0x218] sm:$0xff]  }
 0xb0f   : > { %3057 = vmatprep.subr.bf16.mxu1 %v4616_v10  ;;  %v4634_v10 = vld [vmem:[%s5657_s8 + $0x260] sm:$0xff]  }
 0xb12   : > { %3058 = vmatpush1.bf16.msra.mxu1 %v4614_v11  ;;  %v4635_v11 = vld [vmem:[%s5657_s8 + $0x220] sm:$0xff]  }
 0xb13   : > { %3059 = vmatprep.subr.bf16.mxu1 %v4619_v12  ;;  %v4636_v12 = vld [vmem:[%s5657_s8 + $0x268] sm:$0xff]  }
 0xb16   : > { %3060 = vmatpush1.bf16.msra.mxu1 %v4617_v13 }
 0xb17   : > { %3061 = vmatprep.subr.bf16.mxu1 %v4622_v14 }
 0xb1a   : > { %3062 = vmatpush1.bf16.msra.mxu1 %v4620_v4 }
 0xb1b   : > { %3063 = vmatprep.subr.bf16.mxu1 %v4625_v57 }
 0xb1e   : > { %3064 = vmatpush1.bf16.msra.mxu1 %v4623_v60 }
 0xbc3   : > { %v4143_v6 = vpop.f32.mrb[96].mxu1 }
 0xbc4   : > { %v4144_v22 = vpop.f32.mrb[97].mxu1 }
 0xbc5   : > { %v4145_v19 = vadd.f32 %v4144_v22, %v4143_v6  ;;  %v4146_v20 = vpop.f32.mrb[98].mxu1 }
 0xbc6   : > { %v4147_v32 = vpop.f32.mrb[99].mxu1 }
 0xbc7   : > { %v2828_v17 = vadd.f32 %v4145_v19, %v3846_v15  ;;  %v4148_v26 = vadd.f32 %v4147_v32, %v4146_v20 }
 0xbc9   : > { %v2831_v24 = vadd.f32 %v4148_v26, %v3846_v15  ;;  %v2858_v34 = vmax.f32 %v2828_v17, 0.0 }
 0xbcb   : > { %v2859_v36 = vmax.f32 %v2831_v24, 0.0  ;;  %v4149_v38 = vpop.f32.mrb[100].mxu1 }
 0xbcc   : > { %v4150_v43 = vpop.f32.mrb[101].mxu1 }
 0xbcd   : > { %v4151_v41 = vadd.f32 %v4150_v43, %v4149_v38  ;;  %v4152_v8 = vpop.f32.mrb[102].mxu1  ;;  %v2866_v31 = vpack.c.bf16 %v2859_v36, %v2858_v34  ;;  %v4637_v34 = vld [vmem:[%s5657_s8 + $0x228] sm:$0xff]   ;;  %v4638_v36 = vld [vmem:[%s5657_s8 + $0x270] sm:$0xff]   ;;  %v4641_v43 = vld [vmem:[%s5657_s8 + $0x238] sm:$0xff]  }
 0xbce   : > { %v4153_v25 = vpop.f32.mrb[103].mxu1  ;;  %v4639_v38 = vld [vmem:[%s5657_s8 + $0x230] sm:$0xff]  }
 0xbcf   : > { %v2836_v44 = vadd.f32 %v4151_v41, %v3846_v15  ;;  %v4154_v21 = vadd.f32 %v4153_v25, %v4152_v8  ;;  %4322 = vmatprep.subr.bf16.mxu0 %v2866_v31  ;;  %v3883_v41 = vld [vmem:[%s5656_s7 + $0x8] sm:$0x3] }
 0xbd0   : > { %4323 = vmatpush3.bf16.msra.mxu0 %v2866_v31  ;;  %v2962_v8 = vrot.slane %v3883_v41, %v5088_v50  ;;  %v2966_v31 = vrot.slane %v3883_v41, %v5093_v56 }
 0xbd1   : > { %v2839_v45 = vadd.f32 %v4154_v21, %v3846_v15  ;;  %v2860_v23 = vmax.f32 %v2836_v44, 0.0 }
 0xbd3   : > { %v2861_v29 = vmax.f32 %v2839_v45, 0.0  ;;  %v4155_v33 = vpop.f32.mrb[104].mxu1 }
 0xbd4   : > { %v4156_v58 = vpop.f32.mrb[105].mxu1 }
 0xbd5   : > { %v4157_v62 = vadd.f32 %v4156_v58, %v4155_v33  ;;  %v4158_v35 = vpop.f32.mrb[106].mxu1  ;;  %v2867_v37 = vpack.c.bf16 %v2861_v29, %v2860_v23 }
 0xbd6   : > { %v4159_v39 = vpop.f32.mrb[107].mxu1 }
 0xbd7   : > { %v2844_v51 = vadd.f32 %v4157_v62, %v3846_v15  ;;  %v4160_v46 = vadd.f32 %v4159_v39, %v4158_v35  ;;  %4324 = vmatprep.subr.bf16.mxu0 %v2867_v37 }
 0xbd8   : > { %4325 = vmatpush3.bf16.msra.mxu0 %v2867_v37 }
 0xbd9   : > { %v2847_v42 = vadd.f32 %v4160_v46, %v3846_v15  ;;  %v2862_v53 = vmax.f32 %v2844_v51, 0.0 }
 0xbdb   : > { %v2863_v52 = vmax.f32 %v2847_v42, 0.0  ;;  %v4161_v47 = vpop.f32.mrb[108].mxu1 }
 0xbdc   : > { %v4162_v54 = vpop.f32.mrb[109].mxu1 }
 0xbdd   : > { %v4163_v55 = vadd.f32 %v4162_v54, %v4161_v47  ;;  %v4164_v63 = vpop.f32.mrb[110].mxu1  ;;  %v2868_v48 = vpack.c.bf16 %v2863_v52, %v2862_v53 }
 0xbde   : > { %v4165_v49 = vpop.f32.mrb[111].mxu1 }
 0xbdf   : > { %v2852_v59 = vadd.f32 %v4163_v55, %v3846_v15  ;;  %v4166_v61 = vadd.f32 %v4165_v49, %v4164_v63  ;;  %4326 = vmatprep.subr.bf16.mxu0 %v2868_v48 }
 0xbe0   : > { %4327 = vmatpush3.bf16.msra.mxu0 %v2868_v48 }
 0xbe1   : > { %v2855_v1 = vadd.f32 %v4166_v61, %v3846_v15  ;;  %v2864_v5 = vmax.f32 %v2852_v59, 0.0 }
 0xbe3   : > { %v2865_v0 = vmax.f32 %v2855_v1, 0.0 }
 0xbe5   : > { %v2869_v3 = vpack.c.bf16 %v2865_v0, %v2864_v5 }
 0xbe7   : > { %4328 = vmatprep.subr.bf16.mxu0 %v2869_v3 }
 0xbe8   : > { %4329 = vmatpush3.bf16.msra.mxu0 %v2869_v3 }
 0xbeb   : > { %4331 = vmatmul.mubr.msk.bf16.vlgmr.msra.gmra.mrb[8].mxu0 %vm901_vm3, %v5389_v16  ;;  %v4626_v16 = vld [vmem:[%s5657_s8 + $0x240] sm:$0xff]  }
 0xbec   : > { %4334 = vmatprep.mubr.msk.bf16.mxu0 %vm901_vm3, %v5394_v28  ;;  %v4627_v28 = vld [vmem:[%s5657_s8 + $0x200] sm:$0xff]   ;;  %4175 = vmatprep.subr.bf16.mxu0 %v4626_v16 }
 0xbed   : > { %4176 = vmatpush3.bf16.msra.mxu0 %v4627_v28 }
 0xbf3   : > { %4335 = vmatmul.mubr.msk.bf16.gmra.mrb[12].mxu0 %vm901_vm3, %v5399_v18  ;;  %v4628_v18 = vld [vmem:[%s5657_s8 + $0x248] sm:$0xff]  }
 0xbf4   : > { %4177 = vmatprep.subr.bf16.mxu0 %v4628_v18 }
 0xbf5   : > { %4178 = vmatpush3.bf16.msra.mxu0 %v4629_v27 }
 0xbf6   : > { %4179 = vmatprep.subr.bf16.mxu0 %v4630_v30 }
 0xbf9   : > { %4180 = vmatpush3.bf16.msra.mxu0 %v4631_v2 }
 0xbfa   : > { %4181 = vmatprep.subr.bf16.mxu0 %v4632_v7 }
 0xbfd   : > { %4182 = vmatpush3.bf16.msra.mxu0 %v4633_v9 }
 0xbfe   : > { %4183 = vmatprep.subr.bf16.mxu0 %v4634_v10 }
 0xc01   : > { %4184 = vmatpush3.bf16.msra.mxu0 %v4635_v11 }
 0xc02   : > { %4185 = vmatprep.subr.bf16.mxu0 %v4636_v12 }
 0xc05   : > { %4186 = vmatpush3.bf16.msra.mxu0 %v4637_v34  ;;  %v4712_v34 = vmov 0.0|0.0  }
 0xc06   : > { %4187 = vmatprep.subr.bf16.mxu0 %v4638_v36  ;;  %4357 = vmatprep.subr.bf16.mxu1 %v4712_v34  ;;  %v4714_v36 = vmov 0.0  }
 0xc09   : > { %4188 = vmatpush3.bf16.msra.mxu0 %v4639_v38 }
 0xcbe   : > { %v4332_v13 = vpop.f32.mrb[8].mxu0 }
 0xcbf   : > { %v2904_v14 = vpop.f32.mrb[9].mxu0 }
 0xcc0   : > { %v4333_v4 = vpop.f32.mrb[10].mxu0 }
 0xcc1   : > { %v2936_v6 = vpack.c.bf16 %v4333_v4, %v4332_v13  ;;  %v2907_v15 = vpop.f32.mrb[11].mxu0 }
 0xcc2   : > { %v2935_v22 = vpack.c.bf16 %v2907_v15, %v2904_v14 }
 0xcc4   : > { %3082 = vmatmul.mubr.bf16.vlgmr.msra.gmra.mrb[112].mxu1 %v2935_v22 }
 0xcc5   : > { %3091 = vmatprep.mubr.bf16.mxu1 %v4711_v40 }
 0xcc6   : > { %v4336_v19 = vpop.f32.mrb[12].mxu0 }
 0xcc7   : > { %v2920_v20 = vpop.f32.mrb[13].mxu0 }
 0xcc8   : > { %v4337_v32 = vpop.f32.mrb[14].mxu0 }
 0xcc9   : > { %v2938_v17 = vpack.c.bf16 %v4337_v32, %v4336_v19  ;;  %v2923_v26 = vpop.f32.mrb[15].mxu0 }
 0xcca   : > { %v2937_v24 = vpack.c.bf16 %v2923_v26, %v2920_v20 }
 0xccc   : > { %3092 = vmatmul.mubr.bf16.gmra.mrb[116].mxu1 %v2936_v6 }
 0xccd   : > { %3101 = vmatprep.mubr.bf16.mxu1 %v4711_v40 }
 0xcd4   : > { %3102 = vmatmul.mubr.bf16.gmra.mrb[120].mxu1 %v2937_v24 }
 0xcd5   : > { %3111 = vmatprep.mubr.bf16.mxu1 %v4711_v40  ;;  %v4640_v40 = vld [vmem:[%s5657_s8 + $0x278] sm:$0xff]  }
 0xcd6   : > { %4189 = vmatprep.subr.bf16.mxu0 %v4640_v40 }
 0xcd7   : > { %4190 = vmatpush3.bf16.msra.mxu0 %v4641_v43 }
 0xcdc   : > { %3112 = vmatmul.mubr.bf16.gmra.mrb[124].mxu1 %v2938_v17 }
 0xcdd   : > { %4354 = vmatprep.mubr.msk.f32.mxu1 %vm4713_vm4, %v4714_v36 }
 0xd97   : > { %v3083_v25 = vpop.f32.mrb[112].mxu1 }
 0xd98   : > { %v3084_v44 = vadd.f32 %v3083_v25, %v2962_v8  ;;  %v3085_v21 = vpop.f32.mrb[113].mxu1 }
 0xd99   : > { %v3086_v45 = vadd.f32 %v3085_v21, %v2966_v31  ;;  %v3087_v23 = vpop.f32.mrb[114].mxu1 }
 0xd9a   : > { %v3088_v29 = vadd.f32 %v3087_v23, %v2962_v8  ;;  %v3089_v33 = vpop.f32.mrb[115].mxu1  ;;  %v3122_v62 = vmax.f32 %v3084_v44, 0.0 }
 0xd9b   : > { %v3090_v58 = vadd.f32 %v3089_v33, %v2966_v31  ;;  %v3123_v37 = vmax.f32 %v3086_v45, 0.0 }
 0xd9c   : > { %v3124_v35 = vmax.f32 %v3088_v29, 0.0 }
 0xd9d   : > { %v3125_v39 = vmax.f32 %v3090_v58, 0.0 }
 0xd9e   : > { %v3138_v51 = vpack.c.bf16 %v3124_v35, %v3122_v62 }
 0xd9f   : > { %v3139_v46 = vpack.c.bf16 %v3125_v39, %v3123_v37  ;;  %v3093_v42 = vpop.f32.mrb[116].mxu1 }
 0xda0   : > { %v3094_v53 = vadd.f32 %v3093_v42, %v2962_v8  ;;  %v3095_v52 = vpop.f32.mrb[117].mxu1 }
 0xda1   : > { %v3096_v50 = vadd.f32 %v3095_v52, %v2966_v31  ;;  %v3097_v47 = vpop.f32.mrb[118].mxu1  ;;  %3315 = vmatprep.mubr.bf16.mxu0 %v3139_v46 }
 0xda2   : > { %v3098_v56 = vadd.f32 %v3097_v47, %v2962_v8  ;;  %v3099_v54 = vpop.f32.mrb[119].mxu1  ;;  %3316 = vmatmul.mubr.bf16.vlgmr.msra.gmra.mrb[96].mxu0 %v3138_v51  ;;  %v3126_v63 = vmax.f32 %v3094_v53, 0.0 }
 0xda3   : > { %v3100_v55 = vadd.f32 %v3099_v54, %v2966_v31  ;;  %v3127_v49 = vmax.f32 %v3096_v50, 0.0 }
 0xda4   : > { %v3128_v48 = vmax.f32 %v3098_v56, 0.0 }
 0xda5   : > { %v3129_v59 = vmax.f32 %v3100_v55, 0.0 }
 0xda6   : > { %v3140_v61 = vpack.c.bf16 %v3128_v48, %v3126_v63 }
 0xda7   : > { %v3141_v1 = vpack.c.bf16 %v3129_v59, %v3127_v49  ;;  %v3103_v5 = vpop.f32.mrb[120].mxu1 }
 0xda8   : > { %v3104_v0 = vadd.f32 %v3103_v5, %v2962_v8  ;;  %v3105_v3 = vpop.f32.mrb[121].mxu1 }
 0xda9   : > { %v3106_v57 = vadd.f32 %v3105_v3, %v2966_v31  ;;  %v3107_v60 = vpop.f32.mrb[122].mxu1  ;;  %3323 = vmatprep.mubr.bf16.mxu0 %v3141_v1 }
 0xdaa   : > { %v3108_v16 = vadd.f32 %v3107_v60, %v2962_v8  ;;  %v3109_v28 = vpop.f32.mrb[123].mxu1  ;;  %3324 = vmatmul.mubr.bf16.gmra.mrb[100].mxu0 %v3140_v61  ;;  %v3130_v27 = vmax.f32 %v3104_v0, 0.0 }
 0xdab   : > { %v3110_v18 = vadd.f32 %v3109_v28, %v2966_v31  ;;  %v3131_v2 = vmax.f32 %v3106_v57, 0.0  ;;  %v3348_v57 = vld [vmem:[%s5659_s10] sm:$0xf] }
 0xdac   : > { %v3132_v30 = vmax.f32 %v3108_v16, 0.0 }
 0xdad   : > { %v3133_v7 = vmax.f32 %v3110_v18, 0.0 }
 0xdae   : > { %v3142_v9 = vpack.c.bf16 %v3132_v30, %v3130_v27 }
 0xdaf   : > { %v3143_v10 = vpack.c.bf16 %v3133_v7, %v3131_v2  ;;  %v3113_v11 = vpop.f32.mrb[124].mxu1 }
 0xdb0   : > { %v3114_v12 = vadd.f32 %v3113_v11, %v2962_v8  ;;  %v3115_v13 = vpop.f32.mrb[125].mxu1 }
 0xdb1   : > { %v3116_v14 = vadd.f32 %v3115_v13, %v2966_v31  ;;  %v3117_v4 = vpop.f32.mrb[126].mxu1  ;;  %3331 = vmatprep.mubr.bf16.mxu0 %v3143_v10 }
 0xdb2   : > { %v3118_v6 = vadd.f32 %v3117_v4, %v2962_v8  ;;  %v3119_v15 = vpop.f32.mrb[127].mxu1  ;;  %3332 = vmatmul.mubr.bf16.gmra.mrb[104].mxu0 %v3142_v9  ;;  %v3134_v19 = vmax.f32 %v3114_v12, 0.0  ;;  %v3933_v8 = vld [vmem:[%s5658_s9 + $0x4] ss:$0 sm:$0xff] }
 0xdb3   : > { %v3120_v22 = vadd.f32 %v3119_v15, %v2966_v31  ;;  %v3135_v32 = vmax.f32 %v3116_v14, 0.0 }
 0xdb4   : > { %v3136_v20 = vmax.f32 %v3118_v6, 0.0 }
 0xdb5   : > { %v3137_v17 = vmax.f32 %v3120_v22, 0.0 }
 0xdb6   : > { %v3144_v26 = vpack.c.bf16 %v3136_v20, %v3134_v19 }
 0xdb7   : > { %v3145_v24 = vpack.c.bf16 %v3137_v17, %v3135_v32 }
 0xdb9   : > { %3339 = vmatprep.mubr.bf16.mxu0 %v3145_v24 }
 0xdba   : > { %3340 = vmatmul.mubr.bf16.gmra.mrb[108].mxu0 %v3144_v26 }
 0xe75   : > { %v4191_v38 = vpop.f32.mrb[96].mxu0 }
 0xe76   : > { %v4192_v40 = vpop.f32.mrb[97].mxu0 }
 0xe77   : > { %v4193_v43 = vadd.f32 %v4192_v40, %v4191_v38  ;;  %v4194_v41 = vpop.f32.mrb[98].mxu0 }
 0xe78   : > { %v4195_v31 = vpop.f32.mrb[99].mxu0 }
 0xe79   : > { %v4196_v25 = vadd.f32 %v4195_v31, %v4194_v41  ;;  %v3318_v44 = vadd.f32 %v4193_v43, %v3933_v8 }
 0xe7b   : > { %v3321_v21 = vadd.f32 %v4196_v25, %v3933_v8 }
 0xe7d   : > { %v4358_v45 = vpack.c.bf16 %v3321_v21, %v3318_v44  ;;  %v4197_v23 = vpop.f32.mrb[100].mxu0 }
 0xe7e   : > { %v4198_v29 = vpop.f32.mrb[101].mxu0 }
 0xe7f   : > { %v4199_v33 = vadd.f32 %v4198_v29, %v4197_v23  ;;  %v4200_v58 = vpop.f32.mrb[102].mxu0  ;;  %4359 = vmatpush3.bf16.msra.mxu1 %v4358_v45 }
 0xe80   : > { %v4201_v62 = vpop.f32.mrb[103].mxu0  ;;  %4360 = vmatprep.subr.bf16.mxu1 %v4712_v34 }
 0xe81   : > { %v4202_v35 = vadd.f32 %v4201_v62, %v4200_v58  ;;  %v3326_v37 = vadd.f32 %v4199_v33, %v3933_v8 }
 0xe83   : > { %v3329_v39 = vadd.f32 %v4202_v35, %v3933_v8 }
 0xe85   : > { %v4361_v51 = vpack.c.bf16 %v3329_v39, %v3326_v37  ;;  %v4203_v46 = vpop.f32.mrb[104].mxu0 }
 0xe86   : > { %v4204_v42 = vpop.f32.mrb[105].mxu0 }
 0xe87   : > { %v4205_v53 = vadd.f32 %v4204_v42, %v4203_v46  ;;  %v4206_v52 = vpop.f32.mrb[106].mxu0  ;;  %4362 = vmatpush3.bf16.msra.mxu1 %v4361_v51 }
 0xe88   : > { %v4207_v50 = vpop.f32.mrb[107].mxu0  ;;  %4363 = vmatprep.subr.bf16.mxu1 %v4712_v34 }
 0xe89   : > { %v4208_v47 = vadd.f32 %v4207_v50, %v4206_v52  ;;  %v3334_v56 = vadd.f32 %v4205_v53, %v3933_v8 }
 0xe8b   : > { %v3337_v54 = vadd.f32 %v4208_v47, %v3933_v8 }
 0xe8d   : > { %v4364_v55 = vpack.c.bf16 %v3337_v54, %v3334_v56  ;;  %v4209_v63 = vpop.f32.mrb[108].mxu0 }
 0xe8e   : > { %v4210_v48 = vpop.f32.mrb[109].mxu0 }
 0xe8f   : > { %v4211_v49 = vadd.f32 %v4210_v48, %v4209_v63  ;;  %v4212_v59 = vpop.f32.mrb[110].mxu0  ;;  %4365 = vmatpush3.bf16.msra.mxu1 %v4364_v55 }
 0xe90   : > { %v4213_v61 = vpop.f32.mrb[111].mxu0  ;;  %4366 = vmatprep.subr.bf16.mxu1 %v4712_v34 }
 0xe91   : > { %v4214_v1 = vadd.f32 %v4213_v61, %v4212_v59  ;;  %v3342_v5 = vadd.f32 %v4211_v49, %v3933_v8 }
 0xe93   : > { %v3345_v0 = vadd.f32 %v4214_v1, %v3933_v8 }
 0xe95   : > { %v4367_v3 = vpack.c.bf16 %v3345_v0, %v3342_v5 }
 0xe97   : > { %4368 = vmatpush3.bf16.msra.mxu1 %v4367_v3 }
 0xe9a   : > { %4355 = vmatmul.mubr.msk.f32.vlgmr.msra.gmra.mrb[128].mxu1 %vm901_vm3, %v3348_v57 }
 0xf6d   : > { %v3418_v60 = vpop.f32.mrb[128].mxu1 }
 0xf6e   : > { %3422 = vst [vmem:[%s409_s12] sm:$0xf] %v3418_v60  ;;  %v4356_v16 = vpop.f32.mrb[129].mxu1 }
 0xf6f   : > { %4659 = shalt.err (!%p4656_p3)
}
 0xf70   : > { %s4660_s24 = scalar_lea.hbm %s5609_s16, 64  ;;  %s4664_s29 = scalar_lea.hbm %s5660_s11, 128 }
 0xf71   : > { %p4661_p4 = scmp.ne.s32.totalorder %s5609_s16, %s4660_s24  ;;  %p4665_p9 = scmp.lt.u32.totalorder %s5609_s16, %s5660_s11 }
 0xf72   : > { %p4666_p10 = scmp.lt.u32.totalorder %s4664_s29, %s4660_s24  ;;  %p4668_p12 = scmp.lt.u32.totalorder %s4660_s24, %s5609_s16 }
 0xf73   : > { %p4662_p7 = pnand %p4661_p4, %p4814_p5 }
 0xf74   : > { %p4667_p11 = por %p4666_p10, %p4665_p9 }
 0xf75   : > { %p4663_p8 = pneg %p4662_p7 }
 0xf76   : > { %p4669_p13 = por %p4668_p12, %p4667_p11 }
 0xf78   : > { %p4670_p0 = pnand %p4669_p13, %p4663_p8 }
 0xf7a   : > { %4673 = shalt.err (!%p4670_p0)
}
 0xf7b   : > { %4377 = dma.vmem_to_hbm [thread:$0]  (%p4814_p5), %s5604_s15, 64, %s5609_s16, %s3424_s14  }
 0xf7c PF: > { %p4383_p1 = scmp.ge.s32.totalorder %s4708_s20, 2  ;;  %s3449_s0 = sand.u32 1, %s4696_s17  }
 0xf7d   : > { %s3450_s30 = scalar_lea.sflag [#allocation3], %s3449_s0 }
 0xf7e   : > { %p4380_p2 = pnand %p4383_p1, %p4818_p6 }
 0xf80   : > { %4691 = dma.done.wait (!%p4380_p2), %s3450_s30, 64  }
 0xf81   : > { %4693 = vsyncadd (!%p4380_p2), %s3450_s30, 4294967232  ;;  %p21_p3 = scmp.ge.s32.totalorder %s4801_s23, 4   ;;  %s5665_s17 = smov %s4700_s18 }
 0xf82   : > { %s5666_s18 = smov %s4704_s19  ;;  %s5667_s19 = smov %s4812_s26 }
 0xf83   : > { %s5668_s20 = smov %s4801_s23  ;;  %23 = sbr.rel (!%p21_p3) target bundleno = 5 (0x5), region = 121 }
 0xf8a   :  { %3455 = vsyncpa [#allocation3], 1 }
 0xf8b   :  { %3457 = vsyncpa [#allocation3 + $0x1], 1 }

</bundles_post_ra>
